<compile_context>
chip_gen: v7x
topology: tpu7x:2x2x1
jax: 0.10.0
libtpu: 0.0.40
codegen_flags: <defaults>
</compile_context>

<pallas_src>
import jax
import jax.numpy as jnp
from jax.experimental import pallas as pl
from jax.experimental.pallas import tpu as pltpu

LEAKY_SLOPE = 0.2
LN_EPS = 1e-5
_PAD = 8  # aligned staging offset used to realize the +-1 conv shifts


# ----------------------------- in-kernel helpers -----------------------------

def _leaky_relu(x):
    return jnp.where(x > 0, x, LEAKY_SLOPE * x)


def _edge_masks(R, L):
    """(R,1) boolean masks marking the first / last position of each sequence."""
    lpos = jax.lax.broadcasted_iota(jnp.int32, (R, 1), 0) % L
    return lpos == 0, lpos == (L - 1)


def _conv3_rows(x, masks, w_ref, b_ref, stage_ref):
    """'same' Conv1d(kernel=3, padding=1) on a batch-folded (R, Cin) slab.

    Rows of `x` are ordered b*L + l (R = num_batch * L).  `w_ref` is a
    (3, Cin, Cout) ref holding the [x[l-1], x[l], x[l+1]] taps, `b_ref` is
    (1, Cout).  The shifts are +-1-row windows of the VMEM staging buffer;
    rows that would cross the zero padding or a batch boundary are masked
    with the precomputed `masks = (is_first, is_last)`.
    """
    R, C = x.shape
    is_first, is_last = masks
    stage_ref[pl.ds(_PAD, R), pl.ds(0, C)] = x
    prev = stage_ref[pl.ds(_PAD - 1, R), pl.ds(0, C)]   # row r -> x[r-1]
    nxt = stage_ref[pl.ds(_PAD + 1, R), pl.ds(0, C)]    # row r -> x[r+1]
    prev = jnp.where(is_first, 0.0, prev)               # left pad / batch edge
    nxt = jnp.where(is_last, 0.0, nxt)                  # right pad / batch edge
    y = jnp.dot(prev, w_ref[0], preferred_element_type=jnp.float32)
    y = y + jnp.dot(x, w_ref[1], preferred_element_type=jnp.float32)
    y = y + jnp.dot(nxt, w_ref[2], preferred_element_type=jnp.float32)
    return y + b_ref[...]


def _avgpool2_rows(y, stage_ref):
    """AvgPool1d(kernel=2, stride=2) along L on a batch-folded (R, C) slab.

    L is even at every stage, so row pairs never straddle a batch boundary.
    Implemented as a VPU average of stride-2 sublane reads from VMEM.
    """
    R, C = y.shape
    stage_ref[pl.ds(0, R), pl.ds(0, C)] = y
    even = stage_ref[pl.ds(0, R // 2, 2), pl.ds(0, C)]
    odd = stage_ref[pl.ds(1, R // 2, 2), pl.ds(0, C)]
    return (even + odd) * 0.5


# ------------------------------ fused forward ---------------------------------

def build_discriminator_forward(batch, input_channels, length, num_parameters,
                                base_channels):
    B, Cin, L, P, bc = batch, input_channels, length, num_parameters, base_channels
    assert L % 8 == 0, "length must be divisible by 8 (three /2 downsamples)"
    Lp = L // 8
    C1, C2, C3, C4 = bc, 2 * bc, 4 * bc, 8 * bc

    def kernel(x_ref, pv_ref,
               wi_ref, bi_ref,
               rw1_ref, rb1_ref, rw2_ref, rb2_ref, rw3_ref, rb3_ref,
               d1w_ref, d1b_ref, d2w_ref, d2b_ref, d3w_ref, d3b_ref,
               f1cw_ref, f1pw_ref, f1b_ref, ln_g_ref, ln_b_ref, f2w_ref, f2b_ref,
               o_ref, stage_ref):
        # Precompute the boundary masks once per distinct sequence length
        # (the full-length mask is reused by 4 convs).
        mL = _edge_masks(B * L, L)
        mL2 = _edge_masks(B * (L // 2), L // 2)
        mL4 = _edge_masks(B * (L // 4), L // 4)

        # ---- init conv + LeakyReLU: (B*L, Cin) -> (B*L, C1)
        h = _leaky_relu(_conv3_rows(x_ref[...], mL, wi_ref, bi_ref, stage_ref))

        # ---- ResBlock (faithful to the reference module: LeakyReLU is applied
        #      to the block input; the k=1 conv is the residual branch).
        skip = jnp.dot(h, rw1_ref[...], preferred_element_type=jnp.float32) + rb1_ref[...]
        a = _leaky_relu(h)
        a = _leaky_relu(_conv3_rows(a, mL, rw2_ref, rb2_ref, stage_ref))
        a = _conv3_rows(a, mL, rw3_ref, rb3_ref, stage_ref)
        h = a + skip

        # ---- Down1 / Down2: conv3 + LeakyReLU + AvgPool(2, 2)
        h = _avgpool2_rows(_leaky_relu(_conv3_rows(h, mL, d1w_ref, d1b_ref, stage_ref)),
                           stage_ref)
        h = _avgpool2_rows(_leaky_relu(_conv3_rows(h, mL2, d2w_ref, d2b_ref, stage_ref)),
                           stage_ref)

        # ---- Down3 conv + LeakyReLU; its AvgPool is fused into the dense1
        #      contraction below (per-position strided reads of the staged slab).
        y3 = _leaky_relu(_conv3_rows(h, mL4, d3w_ref, d3b_ref, stage_ref))  # (B*(L//4), C4)
        R3 = y3.shape[0]
        stage_ref[pl.ds(0, R3), pl.ds(0, C4)] = y3

        # ---- dense1 over torch's [flatten(conv), params]: the conv rows of the
        #      weight were re-ordered to position-major on the host, so each
        #      pooled position is an independent (B, C4) @ (C4, 128) matmul.
        z = jnp.dot(pv_ref[...], f1pw_ref[...], preferred_element_type=jnp.float32) + f1b_ref[...]
        for l in range(Lp):
            ev = stage_ref[pl.ds(2 * l, B, 2 * Lp), pl.ds(0, C4)]
            od = stage_ref[pl.ds(2 * l + 1, B, 2 * Lp), pl.ds(0, C4)]
            pos = (ev + od) * 0.5                       # AvgPool slice at position l: (B, C4)
            z = z + jnp.dot(pos, f1cw_ref[l * C4:(l + 1) * C4, :],
                            preferred_element_type=jnp.float32)
        z = _leaky_relu(z)

        # ---- LayerNorm(128): biased variance + affine (matches torch defaults).
        mu = jnp.mean(z, axis=-1, keepdims=True)
        var = jnp.mean((z - mu) ** 2, axis=-1, keepdims=True)
        zn = (z - mu) * jax.lax.rsqrt(var + LN_EPS)
        zn = zn * ln_g_ref[...] + ln_b_ref[...]

        # ---- final dense (128 -> 1) as a lane reduction + sigmoid.
        logit = jnp.sum(zn * f2w_ref[...], axis=-1, keepdims=True) + f2b_ref[...]
        o_ref[...] = jax.nn.sigmoid(logit).astype(o_ref.dtype)

    def forward(p, x_ncl, params_vec):
        # NCL -> batch-folded NLC rows (one tiny XLA copy at the boundary).
        x2d = jnp.transpose(x_ncl, (0, 2, 1)).reshape(B * L, Cin)

        # Split dense1's weight into its conv part (rows re-ordered from torch's
        # C-major flatten to position-major NLC order) and its params part.
        feat_conv = C4 * Lp
        f1cw = (p["fc1_w"][:feat_conv]
                .reshape(C4, Lp, 128).transpose(1, 0, 2).reshape(Lp * C4, 128))
        f1pw = p["fc1_w"][feat_conv:]
        f2w = p["fc2_w"].reshape(1, 128)

        ins = (x2d, params_vec,
               p["init_w"], p["init_b"],
               p["res_w1"], p["res_b1"], p["res_w2"], p["res_b2"],
               p["res_w3"], p["res_b3"],
               p["d1_w"], p["d1_b"], p["d2_w"], p["d2_b"], p["d3_w"], p["d3_b"],
               f1cw, f1pw, p["fc1_b"], p["ln_gamma"], p["ln_beta"], f2w, p["fc2_b"])

        def full_spec(a):
            if a.ndim == 3:
                return pl.BlockSpec(a.shape, lambda i: (0, 0, 0))
            return pl.BlockSpec(a.shape, lambda i: (0, 0))

        flops = (2 * B * L * 3 * Cin * C1            # init conv
                 + 2 * B * L * C1 * C1               # ResBlock conv1 (k=1)
                 + 2 * 2 * B * L * 3 * C1 * C1       # ResBlock conv2/conv3
                 + 2 * B * L * 3 * C1 * C2           # down1 conv
                 + 2 * B * (L // 2) * 3 * C2 * C3    # down2 conv
                 + 2 * B * (L // 4) * 3 * C3 * C4    # down3 conv
                 + 2 * B * (Lp * C4 + P) * 128       # dense1
                 + 2 * B * 128)                      # final dense
        bytes_accessed = 4 * (sum(int(a.size) for a in ins) + B)

        stage_rows = B * L + 2 * _PAD
        stage_cols = max(Cin, C4)

        return pl.pallas_call(
            kernel,
            out_shape=jax.ShapeDtypeStruct((B, 1), jnp.float32),
            grid=(1,),
            in_specs=[full_spec(a) for a in ins],
            out_specs=pl.BlockSpec((B, 1), lambda i: (0, 0)),
            scratch_shapes=[pltpu.VMEM((stage_rows, stage_cols), jnp.float32)],
            compiler_params=pltpu.CompilerParams(
                dimension_semantics=("arbitrary",),
                vmem_limit_bytes=8 * 1024 * 1024),
            cost_estimate=pl.CostEstimate(flops=int(flops), transcendentals=2 * B,
                                          bytes_accessed=int(bytes_accessed)),
        )(*ins)

    return forward


# ------------------------------ parameter init --------------------------------

def init_discriminator_params(key, input_channels, base_channels, length, num_parameters):
    ks = iter(jax.random.split(key, 32))

    def conv_w(cin, cout, ksize):
        scale = 1.0 / jnp.sqrt(jnp.float32(cin * ksize))
        w = scale * jax.random.normal(next(ks), (ksize, cin, cout), jnp.float32)
        b = scale * jax.random.normal(next(ks), (1, cout), jnp.float32)
        return w, b

    bc = base_channels
    p = {}
    p["init_w"], p["init_b"] = conv_w(input_channels, bc, 3)
    w1, p["res_b1"] = conv_w(bc, bc, 1)          # ResBlock conv1 is kernel_size=1
    p["res_w1"] = w1[0]
    p["res_w2"], p["res_b2"] = conv_w(bc, bc, 3)
    p["res_w3"], p["res_b3"] = conv_w(bc, bc, 3)
    p["d1_w"], p["d1_b"] = conv_w(bc, bc * 2, 3)
    p["d2_w"], p["d2_b"] = conv_w(bc * 2, bc * 4, 3)
    p["d3_w"], p["d3_b"] = conv_w(bc * 4, bc * 8, 3)

    feat = bc * 8 * (length // 8) + num_parameters
    s1 = 1.0 / jnp.sqrt(jnp.float32(feat))
    p["fc1_w"] = s1 * jax.random.normal(next(ks), (feat, 128), jnp.float32)
    p["fc1_b"] = s1 * jax.random.normal(next(ks), (1, 128), jnp.float32)
    p["ln_gamma"] = jnp.ones((1, 128), jnp.float32)
    p["ln_beta"] = jnp.zeros((1, 128), jnp.float32)
    s2 = 1.0 / jnp.sqrt(jnp.float32(128))
    p["fc2_w"] = s2 * jax.random.normal(next(ks), (128, 1), jnp.float32)
    p["fc2_b"] = s2 * jax.random.normal(next(ks), (1, 1), jnp.float32)
    return p


# ----------------------------------- main --------------------------------------

if __name__ == "__main__":
    B = 2
    input_channels = 4
    length = 16          # must be divisible by 8 (three /2 downsamples)
    num_parameters = 3
    base_channels = 8

    key = jax.random.PRNGKey(0)
    k_param, k_x, k_p = jax.random.split(key, 3)

    params_tree = init_discriminator_params(
        k_param, input_channels, base_channels, length, num_parameters)

    x = jax.random.normal(k_x, (B, input_channels, length), jnp.float32)
    cond = jax.random.normal(k_p, (B, num_parameters), jnp.float32)

    forward = jax.jit(build_discriminator_forward(
        B, input_channels, length, num_parameters, base_channels))

    out = jax.block_until_ready(forward(params_tree, x, cond))

    assert out.shape == (B, 1)
    assert bool(jnp.all(jnp.isfinite(out)))
    assert bool(jnp.all((out >= 0.0) & (out <= 1.0)))
    print("KERNEL_OK")
</pallas_src>

<mosaic_0001>
module attributes {stable_mosaic.version = 11 : i64} {
  func.func @kernel(%arg0: i32, %arg1: memref<32x4xf32, #tpu.memory_space<vmem>>, %arg2: memref<2x3xf32, #tpu.memory_space<vmem>>, %arg3: memref<3x4x8xf32, #tpu.memory_space<vmem>>, %arg4: memref<1x8xf32, #tpu.memory_space<vmem>>, %arg5: memref<8x8xf32, #tpu.memory_space<vmem>>, %arg6: memref<1x8xf32, #tpu.memory_space<vmem>>, %arg7: memref<3x8x8xf32, #tpu.memory_space<vmem>>, %arg8: memref<1x8xf32, #tpu.memory_space<vmem>>, %arg9: memref<3x8x8xf32, #tpu.memory_space<vmem>>, %arg10: memref<1x8xf32, #tpu.memory_space<vmem>>, %arg11: memref<3x8x16xf32, #tpu.memory_space<vmem>>, %arg12: memref<1x16xf32, #tpu.memory_space<vmem>>, %arg13: memref<3x16x32xf32, #tpu.memory_space<vmem>>, %arg14: memref<1x32xf32, #tpu.memory_space<vmem>>, %arg15: memref<3x32x64xf32, #tpu.memory_space<vmem>>, %arg16: memref<1x64xf32, #tpu.memory_space<vmem>>, %arg17: memref<128x128xf32, #tpu.memory_space<vmem>>, %arg18: memref<3x128xf32, #tpu.memory_space<vmem>>, %arg19: memref<1x128xf32, #tpu.memory_space<vmem>>, %arg20: memref<1x128xf32, #tpu.memory_space<vmem>>, %arg21: memref<1x128xf32, #tpu.memory_space<vmem>>, %arg22: memref<1x128xf32, #tpu.memory_space<vmem>>, %arg23: memref<1x1xf32, #tpu.memory_space<vmem>>, %arg24: memref<2x1xf32, #tpu.memory_space<vmem>>, %arg25: memref<48x64xf32, #tpu.memory_space<vmem>>) attributes {dimension_semantics = [#tpu.dimension_semantics<arbitrary>], iteration_bounds = array<i64: 1>, scalar_prefetch = 0 : i64, scratch_operands = 1 : i64, tpu.core_type = #tpu.core_type<tc>, window_params = [{pipeline_mode = #tpu.pipeline_mode<synchronous>, transform_indices = @transform_0, window_bounds = array<i64: 32, 4>}, {pipeline_mode = #tpu.pipeline_mode<synchronous>, transform_indices = @transform_1, window_bounds = array<i64: 2, 3>}, {pipeline_mode = #tpu.pipeline_mode<synchronous>, transform_indices = @transform_2, window_bounds = array<i64: 3, 4, 8>}, {pipeline_mode = #tpu.pipeline_mode<synchronous>, transform_indices = @transform_3, window_bounds = array<i64: 1, 8>}, {pipeline_mode = #tpu.pipeline_mode<synchronous>, transform_indices = @transform_4, window_bounds = array<i64: 8, 8>}, {pipeline_mode = #tpu.pipeline_mode<synchronous>, transform_indices = @transform_5, window_bounds = array<i64: 1, 8>}, {pipeline_mode = #tpu.pipeline_mode<synchronous>, transform_indices = @transform_6, window_bounds = array<i64: 3, 8, 8>}, {pipeline_mode = #tpu.pipeline_mode<synchronous>, transform_indices = @transform_7, window_bounds = array<i64: 1, 8>}, {pipeline_mode = #tpu.pipeline_mode<synchronous>, transform_indices = @transform_8, window_bounds = array<i64: 3, 8, 8>}, {pipeline_mode = #tpu.pipeline_mode<synchronous>, transform_indices = @transform_9, window_bounds = array<i64: 1, 8>}, {pipeline_mode = #tpu.pipeline_mode<synchronous>, transform_indices = @transform_10, window_bounds = array<i64: 3, 8, 16>}, {pipeline_mode = #tpu.pipeline_mode<synchronous>, transform_indices = @transform_11, window_bounds = array<i64: 1, 16>}, {pipeline_mode = #tpu.pipeline_mode<synchronous>, transform_indices = @transform_12, window_bounds = array<i64: 3, 16, 32>}, {pipeline_mode = #tpu.pipeline_mode<synchronous>, transform_indices = @transform_13, window_bounds = array<i64: 1, 32>}, {pipeline_mode = #tpu.pipeline_mode<synchronous>, transform_indices = @transform_14, window_bounds = array<i64: 3, 32, 64>}, {pipeline_mode = #tpu.pipeline_mode<synchronous>, transform_indices = @transform_15, window_bounds = array<i64: 1, 64>}, {pipeline_mode = #tpu.pipeline_mode<synchronous>, transform_indices = @transform_16, window_bounds = array<i64: 128, 128>}, {pipeline_mode = #tpu.pipeline_mode<synchronous>, transform_indices = @transform_17, window_bounds = array<i64: 3, 128>}, {pipeline_mode = #tpu.pipeline_mode<synchronous>, transform_indices = @transform_18, window_bounds = array<i64: 1, 128>}, {pipeline_mode = #tpu.pipeline_mode<synchronous>, transform_indices = @transform_19, window_bounds = array<i64: 1, 128>}, {pipeline_mode = #tpu.pipeline_mode<synchronous>, transform_indices = @transform_20, window_bounds = array<i64: 1, 128>}, {pipeline_mode = #tpu.pipeline_mode<synchronous>, transform_indices = @transform_21, window_bounds = array<i64: 1, 128>}, {pipeline_mode = #tpu.pipeline_mode<synchronous>, transform_indices = @transform_22, window_bounds = array<i64: 1, 1>}, {pipeline_mode = #tpu.pipeline_mode<synchronous>, transform_indices = @transform_23, window_bounds = array<i64: 2, 1>}]} {
    %0 = tpu.iota {dimensions = array<i32: 0>} : vector<32x1xi32>
    %c16_i32 = arith.constant 16 : i32
    %c0_i32 = arith.constant 0 : i32
    %1 = arith.cmpi eq, %c16_i32, %c0_i32 : i32
    %c1_i32 = arith.constant 1 : i32
    %2 = arith.select %1, %c1_i32, %c16_i32 : i32
    %3 = vector.broadcast %2 : i32 to vector<32x1xi32>
    %4 = arith.remsi %0, %3 : vector<32x1xi32>
    %c0_i32_0 = arith.constant 0 : i32
    %5 = vector.broadcast %c0_i32_0 : i32 to vector<32x1xi32>
    %6 = arith.cmpi ne, %4, %5 : vector<32x1xi32>
    %c0_i32_1 = arith.constant 0 : i32
    %7 = vector.broadcast %c0_i32_1 : i32 to vector<32x1xi32>
    %8 = arith.cmpi slt, %4, %7 : vector<32x1xi32>
    %c0_i32_2 = arith.constant 0 : i32
    %9 = arith.cmpi slt, %2, %c0_i32_2 : i32
    %10 = vector.broadcast %9 : i1 to vector<32x1xi1>
    %11 = vector.broadcast %10 : vector<32x1xi1> to vector<32x1xi1>
    %12 = arith.xori %8, %11 : vector<32x1xi1>
    %13 = arith.andi %12, %6 : vector<32x1xi1>
    %14 = vector.broadcast %2 : i32 to vector<32x1xi32>
    %15 = arith.addi %4, %14 : vector<32x1xi32>
    %16 = arith.select %13, %15, %4 : vector<32x1xi1>, vector<32x1xi32>
    %c0_i32_3 = arith.constant 0 : i32
    %17 = vector.broadcast %c0_i32_3 : i32 to vector<32x1xi32>
    %18 = arith.cmpi eq, %16, %17 : vector<32x1xi32>
    %c15_i32 = arith.constant 15 : i32
    %19 = vector.broadcast %c15_i32 : i32 to vector<32x1xi32>
    %20 = arith.cmpi eq, %16, %19 : vector<32x1xi32>
    %21 = tpu.iota {dimensions = array<i32: 0>} : vector<16x1xi32>
    %c8_i32 = arith.constant 8 : i32
    %c0_i32_4 = arith.constant 0 : i32
    %22 = arith.cmpi eq, %c8_i32, %c0_i32_4 : i32
    %c1_i32_5 = arith.constant 1 : i32
    %23 = arith.select %22, %c1_i32_5, %c8_i32 : i32
    %24 = vector.broadcast %23 : i32 to vector<16x1xi32>
    %25 = arith.remsi %21, %24 : vector<16x1xi32>
    %c0_i32_6 = arith.constant 0 : i32
    %26 = vector.broadcast %c0_i32_6 : i32 to vector<16x1xi32>
    %27 = arith.cmpi ne, %25, %26 : vector<16x1xi32>
    %c0_i32_7 = arith.constant 0 : i32
    %28 = vector.broadcast %c0_i32_7 : i32 to vector<16x1xi32>
    %29 = arith.cmpi slt, %25, %28 : vector<16x1xi32>
    %c0_i32_8 = arith.constant 0 : i32
    %30 = arith.cmpi slt, %23, %c0_i32_8 : i32
    %31 = vector.broadcast %30 : i1 to vector<16x1xi1>
    %32 = vector.broadcast %31 : vector<16x1xi1> to vector<16x1xi1>
    %33 = arith.xori %29, %32 : vector<16x1xi1>
    %34 = arith.andi %33, %27 : vector<16x1xi1>
    %35 = vector.broadcast %23 : i32 to vector<16x1xi32>
    %36 = arith.addi %25, %35 : vector<16x1xi32>
    %37 = arith.select %34, %36, %25 : vector<16x1xi1>, vector<16x1xi32>
    %c0_i32_9 = arith.constant 0 : i32
    %38 = vector.broadcast %c0_i32_9 : i32 to vector<16x1xi32>
    %39 = arith.cmpi eq, %37, %38 : vector<16x1xi32>
    %c7_i32 = arith.constant 7 : i32
    %40 = vector.broadcast %c7_i32 : i32 to vector<16x1xi32>
    %41 = arith.cmpi eq, %37, %40 : vector<16x1xi32>
    %42 = tpu.iota {dimensions = array<i32: 0>} : vector<8x1xi32>
    %c4_i32 = arith.constant 4 : i32
    %c0_i32_10 = arith.constant 0 : i32
    %43 = arith.cmpi eq, %c4_i32, %c0_i32_10 : i32
    %c1_i32_11 = arith.constant 1 : i32
    %44 = arith.select %43, %c1_i32_11, %c4_i32 : i32
    %45 = vector.broadcast %44 : i32 to vector<8x1xi32>
    %46 = arith.remsi %42, %45 : vector<8x1xi32>
    %c0_i32_12 = arith.constant 0 : i32
    %47 = vector.broadcast %c0_i32_12 : i32 to vector<8x1xi32>
    %48 = arith.cmpi ne, %46, %47 : vector<8x1xi32>
    %c0_i32_13 = arith.constant 0 : i32
    %49 = vector.broadcast %c0_i32_13 : i32 to vector<8x1xi32>
    %50 = arith.cmpi slt, %46, %49 : vector<8x1xi32>
    %c0_i32_14 = arith.constant 0 : i32
    %51 = arith.cmpi slt, %44, %c0_i32_14 : i32
    %52 = vector.broadcast %51 : i1 to vector<8x1xi1>
    %53 = vector.broadcast %52 : vector<8x1xi1> to vector<8x1xi1>
    %54 = arith.xori %50, %53 : vector<8x1xi1>
    %55 = arith.andi %54, %48 : vector<8x1xi1>
    %56 = vector.broadcast %44 : i32 to vector<8x1xi32>
    %57 = arith.addi %46, %56 : vector<8x1xi32>
    %58 = arith.select %55, %57, %46 : vector<8x1xi1>, vector<8x1xi32>
    %c0_i32_15 = arith.constant 0 : i32
    %59 = vector.broadcast %c0_i32_15 : i32 to vector<8x1xi32>
    %60 = arith.cmpi eq, %58, %59 : vector<8x1xi32>
    %c3_i32 = arith.constant 3 : i32
    %61 = vector.broadcast %c3_i32 : i32 to vector<8x1xi32>
    %62 = arith.cmpi eq, %58, %61 : vector<8x1xi32>
    %c0 = arith.constant 0 : index
    %c0_16 = arith.constant 0 : index
    %63 = vector.load %arg1[%c0, %c0_16] : memref<32x4xf32, #tpu.memory_space<vmem>>, vector<32x4xf32>
    %c8 = arith.constant 8 : index
    %c0_17 = arith.constant 0 : index
    %64 = vector.load %arg25[%c8, %c0_17] : memref<48x64xf32, #tpu.memory_space<vmem>>, vector<32x4xf32>
    tpu.vector_store %arg25[%c8, %c0_17], %63 {strides = array<i32>} : memref<48x64xf32, #tpu.memory_space<vmem>>, vector<32x4xf32>,
    %c7 = arith.constant 7 : index
    %c0_18 = arith.constant 0 : index
    %65 = vector.load %arg25[%c7, %c0_18] : memref<48x64xf32, #tpu.memory_space<vmem>>, vector<32x4xf32>
    %c9 = arith.constant 9 : index
    %c0_19 = arith.constant 0 : index
    %66 = vector.load %arg25[%c9, %c0_19] : memref<48x64xf32, #tpu.memory_space<vmem>>, vector<32x4xf32>
    %cst = arith.constant 0.000000e+00 : f32
    %67 = vector.shape_cast %18 : vector<32x1xi1> to vector<32x1xi1>
    %68 = vector.broadcast %67 : vector<32x1xi1> to vector<32x4xi1>
    %69 = vector.broadcast %cst : f32 to vector<32x4xf32>
    %70 = arith.select %68, %69, %65 : vector<32x4xi1>, vector<32x4xf32>
    %cst_20 = arith.constant 0.000000e+00 : f32
    %71 = vector.shape_cast %20 : vector<32x1xi1> to vector<32x1xi1>
    %72 = vector.broadcast %71 : vector<32x1xi1> to vector<32x4xi1>
    %73 = vector.broadcast %cst_20 : f32 to vector<32x4xf32>
    %74 = arith.select %72, %73, %66 : vector<32x4xi1>, vector<32x4xf32>
    %c0_21 = arith.constant 0 : index
    %c0_22 = arith.constant 0 : index
    %c0_23 = arith.constant 0 : index
    %75 = vector.load %arg3[%c0_21, %c0_22, %c0_23] : memref<3x4x8xf32, #tpu.memory_space<vmem>>, vector<1x4x8xf32>
    %76 = vector.shape_cast %75 : vector<1x4x8xf32> to vector<4x8xf32>
    %cst_24 = arith.constant dense<0.000000e+00> : vector<32x8xf32>
    %77 = tpu.matmul %70, %76, %cst_24 {dimension_numbers = #tpu.dot_dimension_numbers<[1], [0], [0], [1], [0, 0, 1, 1], [], []>} : vector<32x4xf32>, vector<4x8xf32>, vector<32x8xf32> -> vector<32x8xf32>
    %c1 = arith.constant 1 : index
    %c0_25 = arith.constant 0 : index
    %c0_26 = arith.constant 0 : index
    %78 = vector.load %arg3[%c1, %c0_25, %c0_26] : memref<3x4x8xf32, #tpu.memory_space<vmem>>, vector<1x4x8xf32>
    %79 = vector.shape_cast %78 : vector<1x4x8xf32> to vector<4x8xf32>
    %cst_27 = arith.constant dense<0.000000e+00> : vector<32x8xf32>
    %80 = tpu.matmul %63, %79, %cst_27 {dimension_numbers = #tpu.dot_dimension_numbers<[1], [0], [0], [1], [0, 0, 1, 1], [], []>} : vector<32x4xf32>, vector<4x8xf32>, vector<32x8xf32> -> vector<32x8xf32>
    %81 = arith.addf %77, %80 : vector<32x8xf32>
    %c2 = arith.constant 2 : index
    %c0_28 = arith.constant 0 : index
    %c0_29 = arith.constant 0 : index
    %82 = vector.load %arg3[%c2, %c0_28, %c0_29] : memref<3x4x8xf32, #tpu.memory_space<vmem>>, vector<1x4x8xf32>
    %83 = vector.shape_cast %82 : vector<1x4x8xf32> to vector<4x8xf32>
    %cst_30 = arith.constant dense<0.000000e+00> : vector<32x8xf32>
    %84 = tpu.matmul %74, %83, %cst_30 {dimension_numbers = #tpu.dot_dimension_numbers<[1], [0], [0], [1], [0, 0, 1, 1], [], []>} : vector<32x4xf32>, vector<4x8xf32>, vector<32x8xf32> -> vector<32x8xf32>
    %85 = arith.addf %81, %84 : vector<32x8xf32>
    %c0_31 = arith.constant 0 : index
    %c0_32 = arith.constant 0 : index
    %86 = vector.load %arg4[%c0_31, %c0_32] : memref<1x8xf32, #tpu.memory_space<vmem>>, vector<1x8xf32>
    %87 = vector.broadcast %86 : vector<1x8xf32> to vector<32x8xf32>
    %88 = arith.addf %85, %87 : vector<32x8xf32>
    %cst_33 = arith.constant 0.000000e+00 : f32
    %89 = vector.broadcast %cst_33 : f32 to vector<32x8xf32>
    %90 = arith.cmpf ogt, %88, %89 : vector<32x8xf32>
    %cst_34 = arith.constant 2.000000e-01 : f32
    %91 = vector.broadcast %cst_34 : f32 to vector<32x8xf32>
    %92 = arith.mulf %91, %88 : vector<32x8xf32>
    %93 = arith.select %90, %88, %92 : vector<32x8xi1>, vector<32x8xf32>
    %c0_35 = arith.constant 0 : index
    %c0_36 = arith.constant 0 : index
    %94 = vector.load %arg5[%c0_35, %c0_36] : memref<8x8xf32, #tpu.memory_space<vmem>>, vector<8x8xf32>
    %cst_37 = arith.constant dense<0.000000e+00> : vector<32x8xf32>
    %95 = tpu.matmul %93, %94, %cst_37 {dimension_numbers = #tpu.dot_dimension_numbers<[1], [0], [0], [1], [0, 0, 1, 1], [], []>} : vector<32x8xf32>, vector<8x8xf32>, vector<32x8xf32> -> vector<32x8xf32>
    %c0_38 = arith.constant 0 : index
    %c0_39 = arith.constant 0 : index
    %96 = vector.load %arg6[%c0_38, %c0_39] : memref<1x8xf32, #tpu.memory_space<vmem>>, vector<1x8xf32>
    %97 = vector.broadcast %96 : vector<1x8xf32> to vector<32x8xf32>
    %98 = arith.addf %95, %97 : vector<32x8xf32>
    %cst_40 = arith.constant 0.000000e+00 : f32
    %99 = vector.broadcast %cst_40 : f32 to vector<32x8xf32>
    %100 = arith.cmpf ogt, %93, %99 : vector<32x8xf32>
    %cst_41 = arith.constant 2.000000e-01 : f32
    %101 = vector.broadcast %cst_41 : f32 to vector<32x8xf32>
    %102 = arith.mulf %101, %93 : vector<32x8xf32>
    %103 = arith.select %100, %93, %102 : vector<32x8xi1>, vector<32x8xf32>
    %c8_42 = arith.constant 8 : index
    %c0_43 = arith.constant 0 : index
    %104 = vector.load %arg25[%c8_42, %c0_43] : memref<48x64xf32, #tpu.memory_space<vmem>>, vector<32x8xf32>
    tpu.vector_store %arg25[%c8_42, %c0_43], %103 {strides = array<i32>} : memref<48x64xf32, #tpu.memory_space<vmem>>, vector<32x8xf32>,
    %c7_44 = arith.constant 7 : index
    %c0_45 = arith.constant 0 : index
    %105 = vector.load %arg25[%c7_44, %c0_45] : memref<48x64xf32, #tpu.memory_space<vmem>>, vector<32x8xf32>
    %c9_46 = arith.constant 9 : index
    %c0_47 = arith.constant 0 : index
    %106 = vector.load %arg25[%c9_46, %c0_47] : memref<48x64xf32, #tpu.memory_space<vmem>>, vector<32x8xf32>
    %cst_48 = arith.constant 0.000000e+00 : f32
    %107 = vector.shape_cast %18 : vector<32x1xi1> to vector<32x1xi1>
    %108 = vector.broadcast %107 : vector<32x1xi1> to vector<32x8xi1>
    %109 = vector.broadcast %cst_48 : f32 to vector<32x8xf32>
    %110 = arith.select %108, %109, %105 : vector<32x8xi1>, vector<32x8xf32>
    %cst_49 = arith.constant 0.000000e+00 : f32
    %111 = vector.shape_cast %20 : vector<32x1xi1> to vector<32x1xi1>
    %112 = vector.broadcast %111 : vector<32x1xi1> to vector<32x8xi1>
    %113 = vector.broadcast %cst_49 : f32 to vector<32x8xf32>
    %114 = arith.select %112, %113, %106 : vector<32x8xi1>, vector<32x8xf32>
    %c0_50 = arith.constant 0 : index
    %c0_51 = arith.constant 0 : index
    %c0_52 = arith.constant 0 : index
    %115 = vector.load %arg7[%c0_50, %c0_51, %c0_52] : memref<3x8x8xf32, #tpu.memory_space<vmem>>, vector<1x8x8xf32>
    %116 = vector.shape_cast %115 : vector<1x8x8xf32> to vector<8x8xf32>
    %cst_53 = arith.constant dense<0.000000e+00> : vector<32x8xf32>
    %117 = tpu.matmul %110, %116, %cst_53 {dimension_numbers = #tpu.dot_dimension_numbers<[1], [0], [0], [1], [0, 0, 1, 1], [], []>} : vector<32x8xf32>, vector<8x8xf32>, vector<32x8xf32> -> vector<32x8xf32>
    %c1_54 = arith.constant 1 : index
    %c0_55 = arith.constant 0 : index
    %c0_56 = arith.constant 0 : index
    %118 = vector.load %arg7[%c1_54, %c0_55, %c0_56] : memref<3x8x8xf32, #tpu.memory_space<vmem>>, vector<1x8x8xf32>
    %119 = vector.shape_cast %118 : vector<1x8x8xf32> to vector<8x8xf32>
    %cst_57 = arith.constant dense<0.000000e+00> : vector<32x8xf32>
    %120 = tpu.matmul %103, %119, %cst_57 {dimension_numbers = #tpu.dot_dimension_numbers<[1], [0], [0], [1], [0, 0, 1, 1], [], []>} : vector<32x8xf32>, vector<8x8xf32>, vector<32x8xf32> -> vector<32x8xf32>
    %121 = arith.addf %117, %120 : vector<32x8xf32>
    %c2_58 = arith.constant 2 : index
    %c0_59 = arith.constant 0 : index
    %c0_60 = arith.constant 0 : index
    %122 = vector.load %arg7[%c2_58, %c0_59, %c0_60] : memref<3x8x8xf32, #tpu.memory_space<vmem>>, vector<1x8x8xf32>
    %123 = vector.shape_cast %122 : vector<1x8x8xf32> to vector<8x8xf32>
    %cst_61 = arith.constant dense<0.000000e+00> : vector<32x8xf32>
    %124 = tpu.matmul %114, %123, %cst_61 {dimension_numbers = #tpu.dot_dimension_numbers<[1], [0], [0], [1], [0, 0, 1, 1], [], []>} : vector<32x8xf32>, vector<8x8xf32>, vector<32x8xf32> -> vector<32x8xf32>
    %125 = arith.addf %121, %124 : vector<32x8xf32>
    %c0_62 = arith.constant 0 : index
    %c0_63 = arith.constant 0 : index
    %126 = vector.load %arg8[%c0_62, %c0_63] : memref<1x8xf32, #tpu.memory_space<vmem>>, vector<1x8xf32>
    %127 = vector.broadcast %126 : vector<1x8xf32> to vector<32x8xf32>
    %128 = arith.addf %125, %127 : vector<32x8xf32>
    %cst_64 = arith.constant 0.000000e+00 : f32
    %129 = vector.broadcast %cst_64 : f32 to vector<32x8xf32>
    %130 = arith.cmpf ogt, %128, %129 : vector<32x8xf32>
    %cst_65 = arith.constant 2.000000e-01 : f32
    %131 = vector.broadcast %cst_65 : f32 to vector<32x8xf32>
    %132 = arith.mulf %131, %128 : vector<32x8xf32>
    %133 = arith.select %130, %128, %132 : vector<32x8xi1>, vector<32x8xf32>
    %c8_66 = arith.constant 8 : index
    %c0_67 = arith.constant 0 : index
    %134 = vector.load %arg25[%c8_66, %c0_67] : memref<48x64xf32, #tpu.memory_space<vmem>>, vector<32x8xf32>
    tpu.vector_store %arg25[%c8_66, %c0_67], %133 {strides = array<i32>} : memref<48x64xf32, #tpu.memory_space<vmem>>, vector<32x8xf32>,
    %c7_68 = arith.constant 7 : index
    %c0_69 = arith.constant 0 : index
    %135 = vector.load %arg25[%c7_68, %c0_69] : memref<48x64xf32, #tpu.memory_space<vmem>>, vector<32x8xf32>
    %c9_70 = arith.constant 9 : index
    %c0_71 = arith.constant 0 : index
    %136 = vector.load %arg25[%c9_70, %c0_71] : memref<48x64xf32, #tpu.memory_space<vmem>>, vector<32x8xf32>
    %cst_72 = arith.constant 0.000000e+00 : f32
    %137 = vector.shape_cast %18 : vector<32x1xi1> to vector<32x1xi1>
    %138 = vector.broadcast %137 : vector<32x1xi1> to vector<32x8xi1>
    %139 = vector.broadcast %cst_72 : f32 to vector<32x8xf32>
    %140 = arith.select %138, %139, %135 : vector<32x8xi1>, vector<32x8xf32>
    %cst_73 = arith.constant 0.000000e+00 : f32
    %141 = vector.shape_cast %20 : vector<32x1xi1> to vector<32x1xi1>
    %142 = vector.broadcast %141 : vector<32x1xi1> to vector<32x8xi1>
    %143 = vector.broadcast %cst_73 : f32 to vector<32x8xf32>
    %144 = arith.select %142, %143, %136 : vector<32x8xi1>, vector<32x8xf32>
    %c0_74 = arith.constant 0 : index
    %c0_75 = arith.constant 0 : index
    %c0_76 = arith.constant 0 : index
    %145 = vector.load %arg9[%c0_74, %c0_75, %c0_76] : memref<3x8x8xf32, #tpu.memory_space<vmem>>, vector<1x8x8xf32>
    %146 = vector.shape_cast %145 : vector<1x8x8xf32> to vector<8x8xf32>
    %cst_77 = arith.constant dense<0.000000e+00> : vector<32x8xf32>
    %147 = tpu.matmul %140, %146, %cst_77 {dimension_numbers = #tpu.dot_dimension_numbers<[1], [0], [0], [1], [0, 0, 1, 1], [], []>} : vector<32x8xf32>, vector<8x8xf32>, vector<32x8xf32> -> vector<32x8xf32>
    %c1_78 = arith.constant 1 : index
    %c0_79 = arith.constant 0 : index
    %c0_80 = arith.constant 0 : index
    %148 = vector.load %arg9[%c1_78, %c0_79, %c0_80] : memref<3x8x8xf32, #tpu.memory_space<vmem>>, vector<1x8x8xf32>
    %149 = vector.shape_cast %148 : vector<1x8x8xf32> to vector<8x8xf32>
    %cst_81 = arith.constant dense<0.000000e+00> : vector<32x8xf32>
    %150 = tpu.matmul %133, %149, %cst_81 {dimension_numbers = #tpu.dot_dimension_numbers<[1], [0], [0], [1], [0, 0, 1, 1], [], []>} : vector<32x8xf32>, vector<8x8xf32>, vector<32x8xf32> -> vector<32x8xf32>
    %151 = arith.addf %147, %150 : vector<32x8xf32>
    %c2_82 = arith.constant 2 : index
    %c0_83 = arith.constant 0 : index
    %c0_84 = arith.constant 0 : index
    %152 = vector.load %arg9[%c2_82, %c0_83, %c0_84] : memref<3x8x8xf32, #tpu.memory_space<vmem>>, vector<1x8x8xf32>
    %153 = vector.shape_cast %152 : vector<1x8x8xf32> to vector<8x8xf32>
    %cst_85 = arith.constant dense<0.000000e+00> : vector<32x8xf32>
    %154 = tpu.matmul %144, %153, %cst_85 {dimension_numbers = #tpu.dot_dimension_numbers<[1], [0], [0], [1], [0, 0, 1, 1], [], []>} : vector<32x8xf32>, vector<8x8xf32>, vector<32x8xf32> -> vector<32x8xf32>
    %155 = arith.addf %151, %154 : vector<32x8xf32>
    %c0_86 = arith.constant 0 : index
    %c0_87 = arith.constant 0 : index
    %156 = vector.load %arg10[%c0_86, %c0_87] : memref<1x8xf32, #tpu.memory_space<vmem>>, vector<1x8xf32>
    %157 = vector.broadcast %156 : vector<1x8xf32> to vector<32x8xf32>
    %158 = arith.addf %155, %157 : vector<32x8xf32>
    %159 = arith.addf %158, %98 : vector<32x8xf32>
    %c8_88 = arith.constant 8 : index
    %c0_89 = arith.constant 0 : index
    %160 = vector.load %arg25[%c8_88, %c0_89] : memref<48x64xf32, #tpu.memory_space<vmem>>, vector<32x8xf32>
    tpu.vector_store %arg25[%c8_88, %c0_89], %159 {strides = array<i32>} : memref<48x64xf32, #tpu.memory_space<vmem>>, vector<32x8xf32>,
    %c7_90 = arith.constant 7 : index
    %c0_91 = arith.constant 0 : index
    %161 = vector.load %arg25[%c7_90, %c0_91] : memref<48x64xf32, #tpu.memory_space<vmem>>, vector<32x8xf32>
    %c9_92 = arith.constant 9 : index
    %c0_93 = arith.constant 0 : index
    %162 = vector.load %arg25[%c9_92, %c0_93] : memref<48x64xf32, #tpu.memory_space<vmem>>, vector<32x8xf32>
    %cst_94 = arith.constant 0.000000e+00 : f32
    %163 = vector.shape_cast %18 : vector<32x1xi1> to vector<32x1xi1>
    %164 = vector.broadcast %163 : vector<32x1xi1> to vector<32x8xi1>
    %165 = vector.broadcast %cst_94 : f32 to vector<32x8xf32>
    %166 = arith.select %164, %165, %161 : vector<32x8xi1>, vector<32x8xf32>
    %cst_95 = arith.constant 0.000000e+00 : f32
    %167 = vector.shape_cast %20 : vector<32x1xi1> to vector<32x1xi1>
    %168 = vector.broadcast %167 : vector<32x1xi1> to vector<32x8xi1>
    %169 = vector.broadcast %cst_95 : f32 to vector<32x8xf32>
    %170 = arith.select %168, %169, %162 : vector<32x8xi1>, vector<32x8xf32>
    %c0_96 = arith.constant 0 : index
    %c0_97 = arith.constant 0 : index
    %c0_98 = arith.constant 0 : index
    %171 = vector.load %arg11[%c0_96, %c0_97, %c0_98] : memref<3x8x16xf32, #tpu.memory_space<vmem>>, vector<1x8x16xf32>
    %172 = vector.shape_cast %171 : vector<1x8x16xf32> to vector<8x16xf32>
    %cst_99 = arith.constant dense<0.000000e+00> : vector<32x16xf32>
    %173 = tpu.matmul %166, %172, %cst_99 {dimension_numbers = #tpu.dot_dimension_numbers<[1], [0], [0], [1], [0, 0, 1, 1], [], []>} : vector<32x8xf32>, vector<8x16xf32>, vector<32x16xf32> -> vector<32x16xf32>
    %c1_100 = arith.constant 1 : index
    %c0_101 = arith.constant 0 : index
    %c0_102 = arith.constant 0 : index
    %174 = vector.load %arg11[%c1_100, %c0_101, %c0_102] : memref<3x8x16xf32, #tpu.memory_space<vmem>>, vector<1x8x16xf32>
    %175 = vector.shape_cast %174 : vector<1x8x16xf32> to vector<8x16xf32>
    %cst_103 = arith.constant dense<0.000000e+00> : vector<32x16xf32>
    %176 = tpu.matmul %159, %175, %cst_103 {dimension_numbers = #tpu.dot_dimension_numbers<[1], [0], [0], [1], [0, 0, 1, 1], [], []>} : vector<32x8xf32>, vector<8x16xf32>, vector<32x16xf32> -> vector<32x16xf32>
    %177 = arith.addf %173, %176 : vector<32x16xf32>
    %c2_104 = arith.constant 2 : index
    %c0_105 = arith.constant 0 : index
    %c0_106 = arith.constant 0 : index
    %178 = vector.load %arg11[%c2_104, %c0_105, %c0_106] : memref<3x8x16xf32, #tpu.memory_space<vmem>>, vector<1x8x16xf32>
    %179 = vector.shape_cast %178 : vector<1x8x16xf32> to vector<8x16xf32>
    %cst_107 = arith.constant dense<0.000000e+00> : vector<32x16xf32>
    %180 = tpu.matmul %170, %179, %cst_107 {dimension_numbers = #tpu.dot_dimension_numbers<[1], [0], [0], [1], [0, 0, 1, 1], [], []>} : vector<32x8xf32>, vector<8x16xf32>, vector<32x16xf32> -> vector<32x16xf32>
    %181 = arith.addf %177, %180 : vector<32x16xf32>
    %c0_108 = arith.constant 0 : index
    %c0_109 = arith.constant 0 : index
    %182 = vector.load %arg12[%c0_108, %c0_109] : memref<1x16xf32, #tpu.memory_space<vmem>>, vector<1x16xf32>
    %183 = vector.broadcast %182 : vector<1x16xf32> to vector<32x16xf32>
    %184 = arith.addf %181, %183 : vector<32x16xf32>
    %cst_110 = arith.constant 0.000000e+00 : f32
    %185 = vector.broadcast %cst_110 : f32 to vector<32x16xf32>
    %186 = arith.cmpf ogt, %184, %185 : vector<32x16xf32>
    %cst_111 = arith.constant 2.000000e-01 : f32
    %187 = vector.broadcast %cst_111 : f32 to vector<32x16xf32>
    %188 = arith.mulf %187, %184 : vector<32x16xf32>
    %189 = arith.select %186, %184, %188 : vector<32x16xi1>, vector<32x16xf32>
    %c0_112 = arith.constant 0 : index
    %c0_113 = arith.constant 0 : index
    %190 = vector.load %arg25[%c0_112, %c0_113] : memref<48x64xf32, #tpu.memory_space<vmem>>, vector<32x16xf32>
    tpu.vector_store %arg25[%c0_112, %c0_113], %189 {strides = array<i32>} : memref<48x64xf32, #tpu.memory_space<vmem>>, vector<32x16xf32>,
    %c0_114 = arith.constant 0 : index
    %c0_115 = arith.constant 0 : index
    %191 = tpu.strided_load %arg25[%c0_114, %c0_115] {strides = array<i32: 2, 1>} : memref<48x64xf32, #tpu.memory_space<vmem>>, vector<16x16xf32>
    %c1_116 = arith.constant 1 : index
    %c0_117 = arith.constant 0 : index
    %192 = tpu.strided_load %arg25[%c1_116, %c0_117] {strides = array<i32: 2, 1>} : memref<48x64xf32, #tpu.memory_space<vmem>>, vector<16x16xf32>
    %193 = arith.addf %191, %192 : vector<16x16xf32>
    %cst_118 = arith.constant 5.000000e-01 : f32
    %194 = vector.broadcast %cst_118 : f32 to vector<16x16xf32>
    %195 = arith.mulf %193, %194 : vector<16x16xf32>
    %c8_119 = arith.constant 8 : index
    %c0_120 = arith.constant 0 : index
    %196 = vector.load %arg25[%c8_119, %c0_120] : memref<48x64xf32, #tpu.memory_space<vmem>>, vector<16x16xf32>
    tpu.vector_store %arg25[%c8_119, %c0_120], %195 {strides = array<i32>} : memref<48x64xf32, #tpu.memory_space<vmem>>, vector<16x16xf32>,
    %c7_121 = arith.constant 7 : index
    %c0_122 = arith.constant 0 : index
    %197 = vector.load %arg25[%c7_121, %c0_122] : memref<48x64xf32, #tpu.memory_space<vmem>>, vector<16x16xf32>
    %c9_123 = arith.constant 9 : index
    %c0_124 = arith.constant 0 : index
    %198 = vector.load %arg25[%c9_123, %c0_124] : memref<48x64xf32, #tpu.memory_space<vmem>>, vector<16x16xf32>
    %cst_125 = arith.constant 0.000000e+00 : f32
    %199 = vector.shape_cast %39 : vector<16x1xi1> to vector<16x1xi1>
    %200 = vector.broadcast %199 : vector<16x1xi1> to vector<16x16xi1>
    %201 = vector.broadcast %cst_125 : f32 to vector<16x16xf32>
    %202 = arith.select %200, %201, %197 : vector<16x16xi1>, vector<16x16xf32>
    %cst_126 = arith.constant 0.000000e+00 : f32
    %203 = vector.shape_cast %41 : vector<16x1xi1> to vector<16x1xi1>
    %204 = vector.broadcast %203 : vector<16x1xi1> to vector<16x16xi1>
    %205 = vector.broadcast %cst_126 : f32 to vector<16x16xf32>
    %206 = arith.select %204, %205, %198 : vector<16x16xi1>, vector<16x16xf32>
    %c0_127 = arith.constant 0 : index
    %c0_128 = arith.constant 0 : index
    %c0_129 = arith.constant 0 : index
    %207 = vector.load %arg13[%c0_127, %c0_128, %c0_129] : memref<3x16x32xf32, #tpu.memory_space<vmem>>, vector<1x16x32xf32>
    %208 = vector.shape_cast %207 : vector<1x16x32xf32> to vector<16x32xf32>
    %cst_130 = arith.constant dense<0.000000e+00> : vector<16x32xf32>
    %209 = tpu.matmul %202, %208, %cst_130 {dimension_numbers = #tpu.dot_dimension_numbers<[1], [0], [0], [1], [0, 0, 1, 1], [], []>} : vector<16x16xf32>, vector<16x32xf32>, vector<16x32xf32> -> vector<16x32xf32>
    %c1_131 = arith.constant 1 : index
    %c0_132 = arith.constant 0 : index
    %c0_133 = arith.constant 0 : index
    %210 = vector.load %arg13[%c1_131, %c0_132, %c0_133] : memref<3x16x32xf32, #tpu.memory_space<vmem>>, vector<1x16x32xf32>
    %211 = vector.shape_cast %210 : vector<1x16x32xf32> to vector<16x32xf32>
    %cst_134 = arith.constant dense<0.000000e+00> : vector<16x32xf32>
    %212 = tpu.matmul %195, %211, %cst_134 {dimension_numbers = #tpu.dot_dimension_numbers<[1], [0], [0], [1], [0, 0, 1, 1], [], []>} : vector<16x16xf32>, vector<16x32xf32>, vector<16x32xf32> -> vector<16x32xf32>
    %213 = arith.addf %209, %212 : vector<16x32xf32>
    %c2_135 = arith.constant 2 : index
    %c0_136 = arith.constant 0 : index
    %c0_137 = arith.constant 0 : index
    %214 = vector.load %arg13[%c2_135, %c0_136, %c0_137] : memref<3x16x32xf32, #tpu.memory_space<vmem>>, vector<1x16x32xf32>
    %215 = vector.shape_cast %214 : vector<1x16x32xf32> to vector<16x32xf32>
    %cst_138 = arith.constant dense<0.000000e+00> : vector<16x32xf32>
    %216 = tpu.matmul %206, %215, %cst_138 {dimension_numbers = #tpu.dot_dimension_numbers<[1], [0], [0], [1], [0, 0, 1, 1], [], []>} : vector<16x16xf32>, vector<16x32xf32>, vector<16x32xf32> -> vector<16x32xf32>
    %217 = arith.addf %213, %216 : vector<16x32xf32>
    %c0_139 = arith.constant 0 : index
    %c0_140 = arith.constant 0 : index
    %218 = vector.load %arg14[%c0_139, %c0_140] : memref<1x32xf32, #tpu.memory_space<vmem>>, vector<1x32xf32>
    %219 = vector.broadcast %218 : vector<1x32xf32> to vector<16x32xf32>
    %220 = arith.addf %217, %219 : vector<16x32xf32>
    %cst_141 = arith.constant 0.000000e+00 : f32
    %221 = vector.broadcast %cst_141 : f32 to vector<16x32xf32>
    %222 = arith.cmpf ogt, %220, %221 : vector<16x32xf32>
    %cst_142 = arith.constant 2.000000e-01 : f32
    %223 = vector.broadcast %cst_142 : f32 to vector<16x32xf32>
    %224 = arith.mulf %223, %220 : vector<16x32xf32>
    %225 = arith.select %222, %220, %224 : vector<16x32xi1>, vector<16x32xf32>
    %c0_143 = arith.constant 0 : index
    %c0_144 = arith.constant 0 : index
    %226 = vector.load %arg25[%c0_143, %c0_144] : memref<48x64xf32, #tpu.memory_space<vmem>>, vector<16x32xf32>
    tpu.vector_store %arg25[%c0_143, %c0_144], %225 {strides = array<i32>} : memref<48x64xf32, #tpu.memory_space<vmem>>, vector<16x32xf32>,
    %c0_145 = arith.constant 0 : index
    %c0_146 = arith.constant 0 : index
    %227 = tpu.strided_load %arg25[%c0_145, %c0_146] {strides = array<i32: 2, 1>} : memref<48x64xf32, #tpu.memory_space<vmem>>, vector<8x32xf32>
    %c1_147 = arith.constant 1 : index
    %c0_148 = arith.constant 0 : index
    %228 = tpu.strided_load %arg25[%c1_147, %c0_148] {strides = array<i32: 2, 1>} : memref<48x64xf32, #tpu.memory_space<vmem>>, vector<8x32xf32>
    %229 = arith.addf %227, %228 : vector<8x32xf32>
    %cst_149 = arith.constant 5.000000e-01 : f32
    %230 = vector.broadcast %cst_149 : f32 to vector<8x32xf32>
    %231 = arith.mulf %229, %230 : vector<8x32xf32>
    %c8_150 = arith.constant 8 : index
    %c0_151 = arith.constant 0 : index
    %232 = vector.load %arg25[%c8_150, %c0_151] : memref<48x64xf32, #tpu.memory_space<vmem>>, vector<8x32xf32>
    tpu.vector_store %arg25[%c8_150, %c0_151], %231 {strides = array<i32>} : memref<48x64xf32, #tpu.memory_space<vmem>>, vector<8x32xf32>,
    %c7_152 = arith.constant 7 : index
    %c0_153 = arith.constant 0 : index
    %233 = vector.load %arg25[%c7_152, %c0_153] : memref<48x64xf32, #tpu.memory_space<vmem>>, vector<8x32xf32>
    %c9_154 = arith.constant 9 : index
    %c0_155 = arith.constant 0 : index
    %234 = vector.load %arg25[%c9_154, %c0_155] : memref<48x64xf32, #tpu.memory_space<vmem>>, vector<8x32xf32>
    %cst_156 = arith.constant 0.000000e+00 : f32
    %235 = vector.shape_cast %60 : vector<8x1xi1> to vector<8x1xi1>
    %236 = vector.broadcast %235 : vector<8x1xi1> to vector<8x32xi1>
    %237 = vector.broadcast %cst_156 : f32 to vector<8x32xf32>
    %238 = arith.select %236, %237, %233 : vector<8x32xi1>, vector<8x32xf32>
    %cst_157 = arith.constant 0.000000e+00 : f32
    %239 = vector.shape_cast %62 : vector<8x1xi1> to vector<8x1xi1>
    %240 = vector.broadcast %239 : vector<8x1xi1> to vector<8x32xi1>
    %241 = vector.broadcast %cst_157 : f32 to vector<8x32xf32>
    %242 = arith.select %240, %241, %234 : vector<8x32xi1>, vector<8x32xf32>
    %c0_158 = arith.constant 0 : index
    %c0_159 = arith.constant 0 : index
    %c0_160 = arith.constant 0 : index
    %243 = vector.load %arg15[%c0_158, %c0_159, %c0_160] : memref<3x32x64xf32, #tpu.memory_space<vmem>>, vector<1x32x64xf32>
    %244 = vector.shape_cast %243 : vector<1x32x64xf32> to vector<32x64xf32>
    %cst_161 = arith.constant dense<0.000000e+00> : vector<8x64xf32>
    %245 = tpu.matmul %238, %244, %cst_161 {dimension_numbers = #tpu.dot_dimension_numbers<[1], [0], [0], [1], [0, 0, 1, 1], [], []>} : vector<8x32xf32>, vector<32x64xf32>, vector<8x64xf32> -> vector<8x64xf32>
    %c1_162 = arith.constant 1 : index
    %c0_163 = arith.constant 0 : index
    %c0_164 = arith.constant 0 : index
    %246 = vector.load %arg15[%c1_162, %c0_163, %c0_164] : memref<3x32x64xf32, #tpu.memory_space<vmem>>, vector<1x32x64xf32>
    %247 = vector.shape_cast %246 : vector<1x32x64xf32> to vector<32x64xf32>
    %cst_165 = arith.constant dense<0.000000e+00> : vector<8x64xf32>
    %248 = tpu.matmul %231, %247, %cst_165 {dimension_numbers = #tpu.dot_dimension_numbers<[1], [0], [0], [1], [0, 0, 1, 1], [], []>} : vector<8x32xf32>, vector<32x64xf32>, vector<8x64xf32> -> vector<8x64xf32>
    %249 = arith.addf %245, %248 : vector<8x64xf32>
    %c2_166 = arith.constant 2 : index
    %c0_167 = arith.constant 0 : index
    %c0_168 = arith.constant 0 : index
    %250 = vector.load %arg15[%c2_166, %c0_167, %c0_168] : memref<3x32x64xf32, #tpu.memory_space<vmem>>, vector<1x32x64xf32>
    %251 = vector.shape_cast %250 : vector<1x32x64xf32> to vector<32x64xf32>
    %cst_169 = arith.constant dense<0.000000e+00> : vector<8x64xf32>
    %252 = tpu.matmul %242, %251, %cst_169 {dimension_numbers = #tpu.dot_dimension_numbers<[1], [0], [0], [1], [0, 0, 1, 1], [], []>} : vector<8x32xf32>, vector<32x64xf32>, vector<8x64xf32> -> vector<8x64xf32>
    %253 = arith.addf %249, %252 : vector<8x64xf32>
    %c0_170 = arith.constant 0 : index
    %c0_171 = arith.constant 0 : index
    %254 = vector.load %arg16[%c0_170, %c0_171] : memref<1x64xf32, #tpu.memory_space<vmem>>, vector<1x64xf32>
    %255 = vector.broadcast %254 : vector<1x64xf32> to vector<8x64xf32>
    %256 = arith.addf %253, %255 : vector<8x64xf32>
    %cst_172 = arith.constant 0.000000e+00 : f32
    %257 = vector.broadcast %cst_172 : f32 to vector<8x64xf32>
    %258 = arith.cmpf ogt, %256, %257 : vector<8x64xf32>
    %cst_173 = arith.constant 2.000000e-01 : f32
    %259 = vector.broadcast %cst_173 : f32 to vector<8x64xf32>
    %260 = arith.mulf %259, %256 : vector<8x64xf32>
    %261 = arith.select %258, %256, %260 : vector<8x64xi1>, vector<8x64xf32>
    %c0_174 = arith.constant 0 : index
    %c0_175 = arith.constant 0 : index
    %262 = vector.load %arg25[%c0_174, %c0_175] : memref<48x64xf32, #tpu.memory_space<vmem>>, vector<8x64xf32>
    tpu.vector_store %arg25[%c0_174, %c0_175], %261 {strides = array<i32>} : memref<48x64xf32, #tpu.memory_space<vmem>>, vector<8x64xf32>,
    %c0_176 = arith.constant 0 : index
    %c0_177 = arith.constant 0 : index
    %263 = vector.load %arg2[%c0_176, %c0_177] : memref<2x3xf32, #tpu.memory_space<vmem>>, vector<2x3xf32>
    %c0_178 = arith.constant 0 : index
    %c0_179 = arith.constant 0 : index
    %264 = vector.load %arg18[%c0_178, %c0_179] : memref<3x128xf32, #tpu.memory_space<vmem>>, vector<3x128xf32>
    %cst_180 = arith.constant dense<0.000000e+00> : vector<2x128xf32>
    %265 = tpu.matmul %263, %264, %cst_180 {dimension_numbers = #tpu.dot_dimension_numbers<[1], [0], [0], [1], [0, 0, 1, 1], [], []>} : vector<2x3xf32>, vector<3x128xf32>, vector<2x128xf32> -> vector<2x128xf32>
    %c0_181 = arith.constant 0 : index
    %c0_182 = arith.constant 0 : index
    %266 = vector.load %arg19[%c0_181, %c0_182] : memref<1x128xf32, #tpu.memory_space<vmem>>, vector<1x128xf32>
    %267 = vector.broadcast %266 : vector<1x128xf32> to vector<2x128xf32>
    %268 = arith.addf %265, %267 : vector<2x128xf32>
    %c0_183 = arith.constant 0 : index
    %c0_184 = arith.constant 0 : index
    %269 = tpu.strided_load %arg25[%c0_183, %c0_184] {strides = array<i32: 4, 1>} : memref<48x64xf32, #tpu.memory_space<vmem>>, vector<2x64xf32>
    %c1_185 = arith.constant 1 : index
    %c0_186 = arith.constant 0 : index
    %270 = tpu.strided_load %arg25[%c1_185, %c0_186] {strides = array<i32: 4, 1>} : memref<48x64xf32, #tpu.memory_space<vmem>>, vector<2x64xf32>
    %271 = arith.addf %269, %270 : vector<2x64xf32>
    %cst_187 = arith.constant 5.000000e-01 : f32
    %272 = vector.broadcast %cst_187 : f32 to vector<2x64xf32>
    %273 = arith.mulf %271, %272 : vector<2x64xf32>
    %c0_188 = arith.constant 0 : index
    %c0_189 = arith.constant 0 : index
    %274 = vector.load %arg17[%c0_188, %c0_189] : memref<128x128xf32, #tpu.memory_space<vmem>>, vector<64x128xf32>
    %cst_190 = arith.constant dense<0.000000e+00> : vector<2x128xf32>
    %275 = tpu.matmul %273, %274, %cst_190 {dimension_numbers = #tpu.dot_dimension_numbers<[1], [0], [0], [1], [0, 0, 1, 1], [], []>} : vector<2x64xf32>, vector<64x128xf32>, vector<2x128xf32> -> vector<2x128xf32>
    %276 = arith.addf %268, %275 : vector<2x128xf32>
    %c2_191 = arith.constant 2 : index
    %c0_192 = arith.constant 0 : index
    %277 = tpu.strided_load %arg25[%c2_191, %c0_192] {strides = array<i32: 4, 1>} : memref<48x64xf32, #tpu.memory_space<vmem>>, vector<2x64xf32>
    %c3 = arith.constant 3 : index
    %c0_193 = arith.constant 0 : index
    %278 = tpu.strided_load %arg25[%c3, %c0_193] {strides = array<i32: 4, 1>} : memref<48x64xf32, #tpu.memory_space<vmem>>, vector<2x64xf32>
    %279 = arith.addf %277, %278 : vector<2x64xf32>
    %cst_194 = arith.constant 5.000000e-01 : f32
    %280 = vector.broadcast %cst_194 : f32 to vector<2x64xf32>
    %281 = arith.mulf %279, %280 : vector<2x64xf32>
    %c64 = arith.constant 64 : index
    %c0_195 = arith.constant 0 : index
    %282 = vector.load %arg17[%c64, %c0_195] : memref<128x128xf32, #tpu.memory_space<vmem>>, vector<64x128xf32>
    %cst_196 = arith.constant dense<0.000000e+00> : vector<2x128xf32>
    %283 = tpu.matmul %281, %282, %cst_196 {dimension_numbers = #tpu.dot_dimension_numbers<[1], [0], [0], [1], [0, 0, 1, 1], [], []>} : vector<2x64xf32>, vector<64x128xf32>, vector<2x128xf32> -> vector<2x128xf32>
    %284 = arith.addf %276, %283 : vector<2x128xf32>
    %cst_197 = arith.constant 0.000000e+00 : f32
    %285 = vector.broadcast %cst_197 : f32 to vector<2x128xf32>
    %286 = arith.cmpf ogt, %284, %285 : vector<2x128xf32>
    %cst_198 = arith.constant 2.000000e-01 : f32
    %287 = vector.broadcast %cst_198 : f32 to vector<2x128xf32>
    %288 = arith.mulf %287, %284 : vector<2x128xf32>
    %289 = arith.select %286, %284, %288 : vector<2x128xi1>, vector<2x128xf32>
    %cst_199 = arith.constant dense<0.000000e+00> : vector<2xf32>
    %290 = vector.multi_reduction <add>, %289, %cst_199 [1] : vector<2x128xf32> to vector<2xf32>
    %291 = vector.shape_cast %290 : vector<2xf32> to vector<2x1xf32>
    %cst_200 = arith.constant 1.280000e+02 : f32
    %292 = vector.broadcast %cst_200 : f32 to vector<2x1xf32>
    %293 = arith.divf %291, %292 : vector<2x1xf32>
    %294 = vector.broadcast %293 : vector<2x1xf32> to vector<2x128xf32>
    %295 = arith.subf %289, %294 : vector<2x128xf32>
    %296 = arith.mulf %295, %295 : vector<2x128xf32>
    %cst_201 = arith.constant dense<0.000000e+00> : vector<2xf32>
    %297 = vector.multi_reduction <add>, %296, %cst_201 [1] : vector<2x128xf32> to vector<2xf32>
    %298 = vector.shape_cast %297 : vector<2xf32> to vector<2x1xf32>
    %cst_202 = arith.constant 1.280000e+02 : f32
    %299 = vector.broadcast %cst_202 : f32 to vector<2x1xf32>
    %300 = arith.divf %298, %299 : vector<2x1xf32>
    %301 = vector.broadcast %293 : vector<2x1xf32> to vector<2x128xf32>
    %302 = arith.subf %289, %301 : vector<2x128xf32>
    %cst_203 = arith.constant 9.99999974E-6 : f32
    %303 = vector.broadcast %cst_203 : f32 to vector<2x1xf32>
    %304 = arith.addf %300, %303 : vector<2x1xf32>
    %305 = math.rsqrt %304 : vector<2x1xf32>
    %306 = vector.broadcast %305 : vector<2x1xf32> to vector<2x128xf32>
    %307 = arith.mulf %302, %306 : vector<2x128xf32>
    %c0_204 = arith.constant 0 : index
    %c0_205 = arith.constant 0 : index
    %308 = vector.load %arg20[%c0_204, %c0_205] : memref<1x128xf32, #tpu.memory_space<vmem>>, vector<1x128xf32>
    %309 = vector.broadcast %308 : vector<1x128xf32> to vector<2x128xf32>
    %310 = arith.mulf %307, %309 : vector<2x128xf32>
    %c0_206 = arith.constant 0 : index
    %c0_207 = arith.constant 0 : index
    %311 = vector.load %arg21[%c0_206, %c0_207] : memref<1x128xf32, #tpu.memory_space<vmem>>, vector<1x128xf32>
    %312 = vector.broadcast %311 : vector<1x128xf32> to vector<2x128xf32>
    %313 = arith.addf %310, %312 : vector<2x128xf32>
    %c0_208 = arith.constant 0 : index
    %c0_209 = arith.constant 0 : index
    %314 = vector.load %arg22[%c0_208, %c0_209] : memref<1x128xf32, #tpu.memory_space<vmem>>, vector<1x128xf32>
    %315 = vector.broadcast %314 : vector<1x128xf32> to vector<2x128xf32>
    %316 = arith.mulf %313, %315 : vector<2x128xf32>
    %cst_210 = arith.constant dense<0.000000e+00> : vector<2xf32>
    %317 = vector.multi_reduction <add>, %316, %cst_210 [1] : vector<2x128xf32> to vector<2xf32>
    %318 = vector.shape_cast %317 : vector<2xf32> to vector<2x1xf32>
    %c0_211 = arith.constant 0 : index
    %c0_212 = arith.constant 0 : index
    %319 = vector.load %arg23[%c0_211, %c0_212] : memref<1x1xf32, #tpu.memory_space<vmem>>, vector<1x1xf32>
    %320 = vector.broadcast %319 : vector<1x1xf32> to vector<2x1xf32>
    %321 = arith.addf %318, %320 : vector<2x1xf32>
    %322 = arith.negf %321 : vector<2x1xf32>
    %323 = math.exp %322 : vector<2x1xf32>
    %cst_213 = arith.constant 1.000000e+00 : f32
    %324 = vector.broadcast %cst_213 : f32 to vector<2x1xf32>
    %325 = arith.addf %324, %323 : vector<2x1xf32>
    %326 = arith.divf %324, %325 : vector<2x1xf32>
    %c0_214 = arith.constant 0 : index
    %c0_215 = arith.constant 0 : index
    %327 = vector.load %arg24[%c0_214, %c0_215] : memref<2x1xf32, #tpu.memory_space<vmem>>, vector<2x1xf32>
    tpu.vector_store %arg24[%c0_214, %c0_215], %326 {strides = array<i32>} : memref<2x1xf32, #tpu.memory_space<vmem>>, vector<2x1xf32>,
    return
  }
  func.func @transform_0(%arg0: i32) -> (i32, i32) {
    %c0_i32 = arith.constant 0 : i32
    %c0_i32_0 = arith.constant 0 : i32
    %c0_i32_1 = arith.constant 0 : i32
    return %c0_i32, %c0_i32_0 : i32, i32
  }
  func.func @transform_1(%arg0: i32) -> (i32, i32) {
    %c0_i32 = arith.constant 0 : i32
    %c0_i32_0 = arith.constant 0 : i32
    %c0_i32_1 = arith.constant 0 : i32
    return %c0_i32, %c0_i32_0 : i32, i32
  }
  func.func @transform_2(%arg0: i32) -> (i32, i32, i32) {
    %c0_i32 = arith.constant 0 : i32
    %c0_i32_0 = arith.constant 0 : i32
    %c0_i32_1 = arith.constant 0 : i32
    %c0_i32_2 = arith.constant 0 : i32
    return %c0_i32, %c0_i32_0, %c0_i32_1 : i32, i32, i32
  }
  func.func @transform_3(%arg0: i32) -> (i32, i32) {
    %c0_i32 = arith.constant 0 : i32
    %c0_i32_0 = arith.constant 0 : i32
    %c0_i32_1 = arith.constant 0 : i32
    return %c0_i32, %c0_i32_0 : i32, i32
  }
  func.func @transform_4(%arg0: i32) -> (i32, i32) {
    %c0_i32 = arith.constant 0 : i32
    %c0_i32_0 = arith.constant 0 : i32
    %c0_i32_1 = arith.constant 0 : i32
    return %c0_i32, %c0_i32_0 : i32, i32
  }
  func.func @transform_5(%arg0: i32) -> (i32, i32) {
    %c0_i32 = arith.constant 0 : i32
    %c0_i32_0 = arith.constant 0 : i32
    %c0_i32_1 = arith.constant 0 : i32
    return %c0_i32, %c0_i32_0 : i32, i32
  }
  func.func @transform_6(%arg0: i32) -> (i32, i32, i32) {
    %c0_i32 = arith.constant 0 : i32
    %c0_i32_0 = arith.constant 0 : i32
    %c0_i32_1 = arith.constant 0 : i32
    %c0_i32_2 = arith.constant 0 : i32
    return %c0_i32, %c0_i32_0, %c0_i32_1 : i32, i32, i32
  }
  func.func @transform_7(%arg0: i32) -> (i32, i32) {
    %c0_i32 = arith.constant 0 : i32
    %c0_i32_0 = arith.constant 0 : i32
    %c0_i32_1 = arith.constant 0 : i32
    return %c0_i32, %c0_i32_0 : i32, i32
  }
  func.func @transform_8(%arg0: i32) -> (i32, i32, i32) {
    %c0_i32 = arith.constant 0 : i32
    %c0_i32_0 = arith.constant 0 : i32
    %c0_i32_1 = arith.constant 0 : i32
    %c0_i32_2 = arith.constant 0 : i32
    return %c0_i32, %c0_i32_0, %c0_i32_1 : i32, i32, i32
  }
  func.func @transform_9(%arg0: i32) -> (i32, i32) {
    %c0_i32 = arith.constant 0 : i32
    %c0_i32_0 = arith.constant 0 : i32
    %c0_i32_1 = arith.constant 0 : i32
    return %c0_i32, %c0_i32_0 : i32, i32
  }
  func.func @transform_10(%arg0: i32) -> (i32, i32, i32) {
    %c0_i32 = arith.constant 0 : i32
    %c0_i32_0 = arith.constant 0 : i32
    %c0_i32_1 = arith.constant 0 : i32
    %c0_i32_2 = arith.constant 0 : i32
    return %c0_i32, %c0_i32_0, %c0_i32_1 : i32, i32, i32
  }
  func.func @transform_11(%arg0: i32) -> (i32, i32) {
    %c0_i32 = arith.constant 0 : i32
    %c0_i32_0 = arith.constant 0 : i32
    %c0_i32_1 = arith.constant 0 : i32
    return %c0_i32, %c0_i32_0 : i32, i32
  }
  func.func @transform_12(%arg0: i32) -> (i32, i32, i32) {
    %c0_i32 = arith.constant 0 : i32
    %c0_i32_0 = arith.constant 0 : i32
    %c0_i32_1 = arith.constant 0 : i32
    %c0_i32_2 = arith.constant 0 : i32
    return %c0_i32, %c0_i32_0, %c0_i32_1 : i32, i32, i32
  }
  func.func @transform_13(%arg0: i32) -> (i32, i32) {
    %c0_i32 = arith.constant 0 : i32
    %c0_i32_0 = arith.constant 0 : i32
    %c0_i32_1 = arith.constant 0 : i32
    return %c0_i32, %c0_i32_0 : i32, i32
  }
  func.func @transform_14(%arg0: i32) -> (i32, i32, i32) {
    %c0_i32 = arith.constant 0 : i32
    %c0_i32_0 = arith.constant 0 : i32
    %c0_i32_1 = arith.constant 0 : i32
    %c0_i32_2 = arith.constant 0 : i32
    return %c0_i32, %c0_i32_0, %c0_i32_1 : i32, i32, i32
  }
  func.func @transform_15(%arg0: i32) -> (i32, i32) {
    %c0_i32 = arith.constant 0 : i32
    %c0_i32_0 = arith.constant 0 : i32
    %c0_i32_1 = arith.constant 0 : i32
    return %c0_i32, %c0_i32_0 : i32, i32
  }
  func.func @transform_16(%arg0: i32) -> (i32, i32) {
    %c0_i32 = arith.constant 0 : i32
    %c0_i32_0 = arith.constant 0 : i32
    %c0_i32_1 = arith.constant 0 : i32
    return %c0_i32, %c0_i32_0 : i32, i32
  }
  func.func @transform_17(%arg0: i32) -> (i32, i32) {
    %c0_i32 = arith.constant 0 : i32
    %c0_i32_0 = arith.constant 0 : i32
    %c0_i32_1 = arith.constant 0 : i32
    return %c0_i32, %c0_i32_0 : i32, i32
  }
  func.func @transform_18(%arg0: i32) -> (i32, i32) {
    %c0_i32 = arith.constant 0 : i32
    %c0_i32_0 = arith.constant 0 : i32
    %c0_i32_1 = arith.constant 0 : i32
    return %c0_i32, %c0_i32_0 : i32, i32
  }
  func.func @transform_19(%arg0: i32) -> (i32, i32) {
    %c0_i32 = arith.constant 0 : i32
    %c0_i32_0 = arith.constant 0 : i32
    %c0_i32_1 = arith.constant 0 : i32
    return %c0_i32, %c0_i32_0 : i32, i32
  }
  func.func @transform_20(%arg0: i32) -> (i32, i32) {
    %c0_i32 = arith.constant 0 : i32
    %c0_i32_0 = arith.constant 0 : i32
    %c0_i32_1 = arith.constant 0 : i32
    return %c0_i32, %c0_i32_0 : i32, i32
  }
  func.func @transform_21(%arg0: i32) -> (i32, i32) {
    %c0_i32 = arith.constant 0 : i32
    %c0_i32_0 = arith.constant 0 : i32
    %c0_i32_1 = arith.constant 0 : i32
    return %c0_i32, %c0_i32_0 : i32, i32
  }
  func.func @transform_22(%arg0: i32) -> (i32, i32) {
    %c0_i32 = arith.constant 0 : i32
    %c0_i32_0 = arith.constant 0 : i32
    %c0_i32_1 = arith.constant 0 : i32
    return %c0_i32, %c0_i32_0 : i32, i32
  }
  func.func @transform_23(%arg0: i32) -> (i32, i32) {
    %c0_i32 = arith.constant 0 : i32
    %c0_i32_0 = arith.constant 0 : i32
    %c0_i32_1 = arith.constant 0 : i32
    return %c0_i32, %c0_i32_0 : i32, i32
  }
}

</mosaic_0001>

<bundles_post_ra>
// kernel: forward.1
= control target key start
LH: loop header
LB: loop body
LE: loop exit
PB: predicated region body
PF: predicated region fallthrough
CT: control target
= control target key end

     0   :  { %vm235_vm0 = vcmask 1043456   ;;  %vm183_vm1 = vcmask 31744   ;;  %v76_v0 = vlaneseq  ;;  %vm561_vm8 = vcmask 64512   ;;  %s3614_s2 = inlined_call_operand.vmem [shape: f32[3,4,8], index: 2, kind: input, shape index: {}]   ;;  %s3615_s0 = inlined_call_operand.vmem [shape: f32[32,4], index: 0, kind: input, shape index: {}]   ;;  %s3616_s4 = inlined_call_operand.vmem [shape: f32[8,8], index: 4, kind: input, shape index: {}]   ;;  %s3617_s6 = inlined_call_operand.vmem [shape: f32[3,8,8], index: 6, kind: input, shape index: {}]   ;;  %s3618_s3 = inlined_call_operand.vmem [shape: f32[1,8], index: 3, kind: input, shape index: {}]   ;;  %s3619_s8 = inlined_call_operand.vmem [shape: f32[3,8,8], index: 8, kind: input, shape index: {}]   ;;  %s3620_s7 = inlined_call_operand.vmem [shape: f32[1,8], index: 7, kind: input, shape index: {}]   ;;  %s3621_s10 = inlined_call_operand.vmem [shape: f32[3,8,16], index: 10, kind: input, shape index: {}]   ;;  %s3622_s5 = inlined_call_operand.vmem [shape: f32[1,8], index: 5, kind: input, shape index: {}]   ;;  %s3623_s9 = inlined_call_operand.vmem [shape: f32[1,8], index: 9, kind: input, shape index: {}]   ;;  %s3624_s12 = inlined_call_operand.vmem [shape: f32[3,16,32], index: 12, kind: input, shape index: {}]   ;;  %s3625_s11 = inlined_call_operand.vmem [shape: f32[1,16], index: 11, kind: input, shape index: {}]   ;;  %s3626_s14 = inlined_call_operand.vmem [shape: f32[3,32,64], index: 14, kind: input, shape index: {}]   ;;  %s3627_s13 = inlined_call_operand.vmem [shape: f32[1,32], index: 13, kind: input, shape index: {}]   ;;  %s3628_s17 = inlined_call_operand.vmem [shape: f32[3,128], index: 17, kind: input, shape index: {}]   ;;  %s3629_s16 = inlined_call_operand.vmem [shape: f32[128,128], index: 16, kind: input, shape index: {}]   ;;  %s3630_s1 = inlined_call_operand.vmem [shape: f32[2,3], index: 1, kind: input, shape index: {}]   ;;  %s3631_s15 = inlined_call_operand.vmem [shape: f32[1,64], index: 15, kind: input, shape index: {}]   ;;  %s3632_s18 = inlined_call_operand.vmem [shape: f32[1,128], index: 18, kind: input, shape index: {}]   ;;  %s3633_s22 = inlined_call_operand.<no memory space> [shape: f32[1,1], index: 22, kind: input, shape index: {}]   ;;  %s3634_s19 = inlined_call_operand.vmem [shape: f32[1,128], index: 19, kind: input, shape index: {}]   ;;  %s3635_s20 = inlined_call_operand.vmem [shape: f32[1,128], index: 20, kind: input, shape index: {}]   ;;  %s3636_s21 = inlined_call_operand.vmem [shape: f32[1,128], index: 21, kind: input, shape index: {}]   ;;  %s3637_s23 = inlined_call_operand.vmem [shape: f32[2,1], index: 23, kind: output, shape index: {}]  }
   0x1   :  { %3643 = sst [smem:[#allocation4_spill]] %s3614_s2  ;;  %v2652_v24 = vld [vmem:[%s3624_s12 + $0x18] sm:$0xff]  ;;  %v1727_v29 = vld [vmem:[%s3624_s12 + $0x8] sm:$0xff] }
   0x2   :  { %3644 = sst [smem:[#allocation5_spill]] %s3615_s0  ;;  %s3651_s24 = sld [smem:[#allocation4_spill]]  ;;  %v3256_v7 = vshrl.u32 %v76_v0, 7 }
   0x3   :  { %3645 = sst [smem:[#allocation6_spill]] %s3616_s4  ;;  %s3652_s0 = sld [smem:[#allocation5_spill]] }
   0x4   :  { %3646 = sst [smem:[#allocation7_spill]] %s3617_s6  ;;  %v85_v9 = vand.u32 15, %v3256_v7  ;;  %v79_v10 = vadd.s32 16, %v3256_v7  ;;  %v3272_v12 = vadd.s32 8, %v3256_v7  ;;  %v80_v20 = vadd.s32 24, %v3256_v7  ;;  %s3661_s25 = sld [smem:[#allocation6_spill]] }
   0x5   :  { %3647 = sst [smem:[#allocation8_spill]] %s3618_s3  ;;  %s3662_s26 = sld [smem:[#allocation7_spill]] }
   0x6   :  { %3648 = sst [smem:[#allocation9_spill]] %s3619_s8  ;;  %v99_v11 = vand.u32 15, %v79_v10  ;;  %vm3274_vm2 = vcmp.eq.s32.totalorder %v85_v9, 0  ;;  %v92_v19 = vand.u32 15, %v3272_v12  ;;  %v106_v26 = vand.u32 15, %v80_v20  ;;  %s3663_s27 = sld [smem:[#allocation8_spill]] }
   0x7   :  { %3649 = sst [smem:[#allocation10_spill]] %s3620_s7  ;;  %s3664_s30 = sld [smem:[#allocation9_spill]] }
   0x8   :  { %3650 = sst [smem:[#allocation11_spill]] %s3621_s10  ;;  %v2583_v1 = vld [vmem:[%s3651_s24 + $0x4] sm:$0xf]  ;;  %v220_v4 = vld [vmem:[%s3651_s24] sm:$0xf]  ;;  %vm3279_vm3 = vcmp.eq.s32.totalorder %v99_v11, 0 }
   0x9   :  { %v179_v2 = vld [vmem:[%s3652_s0] sm:$0xff]  ;;  %v180_v3 = vld [vmem:[%s3652_s0 + $0x8] sm:$0xff]  ;;  %2796 = vmatprep.subr.msk.mxu0 %vm235_vm0, %v2583_v1  ;;  %v181_v5 = vld [vmem:[%s3652_s0 + $0x10] sm:$0xff]  ;;  %vm3293_vm4 = vcmp.eq.s32.totalorder %v92_v19, 15  ;;  %vm3301_vm5 = vcmp.eq.s32.totalorder %v106_v26, 15  ;;  %s3666_s28 = sld [smem:[#allocation11_spill]] }
   0xa   :  { %184 = vst.msk [vmem:[#allocation2 + $0x8] sm:$0xff] %vm183_vm1, %v179_v2  ;;  %2798 = vmatprep.mubr.msk.f32.mxu0 %vm183_vm1, %v179_v2  ;;  %185 = vst.msk [vmem:[#allocation2 + $0x10] sm:$0xff] %vm183_vm1, %v180_v3  ;;  %v182_v6 = vld [vmem:[%s3652_s0 + $0x18] sm:$0xff]  ;;  %2797 = vmatpush3.msk.msra.mxu0 %vm235_vm0, %v2583_v1  ;;  %v2594_v8 = vld [vmem:[%s3651_s24 + $0x8] sm:$0xf] }
   0xb   :  { %186 = vst.msk [vmem:[#allocation2 + $0x18] sm:$0xff] %vm183_vm1, %v181_v5  ;;  %187 = vst.msk [vmem:[#allocation2 + $0x20] sm:$0xff] %vm183_vm1, %v182_v6  ;;  %2799 = vmatmul.mubr.msk.f32.vlgmr.msra.gmra.mrb[0].mxu0 %vm183_vm1, %v180_v3  ;;  %2804 = vmatprep.subr.msk.mxu0 %vm235_vm0, %v220_v4  ;;  %v553_v32 = vld [vmem:[%s3661_s25] sm:$0xff]  ;;  %v2606_v33 = vld [vmem:[%s3662_s26 + $0x8] sm:$0xff] }
   0xc   :  { %2805 = vmatpush3.msk.msra.mxu0 %vm235_vm0, %v220_v4  ;;  %2801 = vmatprep.mubr.msk.f32.mxu0 %vm183_vm1, %v181_v5  ;;  %v2600_v34 = vld [vmem:[%s3663_s27] ss:$0 sm:$0xff]  ;;  %v2615_v60 = vld [vmem:[%s3662_s26 + $0x10] sm:$0xff] }
   0xd   :  { %2812 = vmatprep.subr.msk.mxu0 %vm235_vm0, %v2594_v8  ;;  %2820 = vmatprep.subr.mxu1 %v553_v32  ;;  %v691_v48 = vld [vmem:[%s3662_s26] sm:$0xff]  ;;  %v2621_v10 = vld [vmem:[%s3664_s30 + $0x8] sm:$0xff]  ;;  %s3665_s26 = sld [smem:[#allocation10_spill]] }
   0xe   :  { %2821 = vmatpush3.msra.mxu1 %v553_v32  ;;  %v1034_v11 = vld [vmem:[%s3664_s30] sm:$0xff] }
   0xf   :  { %2802 = vmatmul.mubr.msk.f32.gmra.mrb[2].mxu0 %vm183_vm1, %v182_v6  ;;  %2828 = vmatprep.subr.mxu1 %v2606_v33 }
  0x11   :  { %v188_v15 = vld [vmem:[#allocation2 + $0x7] sm:$0xff]  ;;  %v189_v16 = vld [vmem:[#allocation2 + $0xf] sm:$0xff] }
  0x12   :  { %v204_v17 = vsel %vm3274_vm2, 0.0, %v188_v15  ;;  %v190_v18 = vld [vmem:[#allocation2 + $0x17] sm:$0xff]  ;;  %v191_v22 = vld [vmem:[#allocation2 + $0x1f] sm:$0xff]  ;;  %v192_v23 = vld [vmem:[#allocation2 + $0x9] sm:$0xff] }
  0x13   :  { %2806 = vmatprep.mubr.msk.f32.mxu0 %vm183_vm1, %v204_v17  ;;  %v206_v21 = vsel %vm3279_vm3, 0.0, %v190_v18  ;;  %v193_v25 = vld [vmem:[#allocation2 + $0x11] sm:$0xff]  ;;  %v194_v28 = vld [vmem:[#allocation2 + $0x19] sm:$0xff]  ;;  %v195_v30 = vld [vmem:[#allocation2 + $0x21] sm:$0xff] }
  0x14   :  { %2807 = vmatmul.mubr.msk.f32.vlgmr.msra.gmra.mrb[0].mxu0 %vm183_vm1, %v189_v16  ;;  %v217_v27 = vsel %vm3293_vm4, 0.0, %v193_v25  ;;  %v219_v31 = vsel %vm3301_vm5, 0.0, %v195_v30  ;;  %v2620_v15 = vld [vmem:[%s3665_s26] ss:$0 sm:$0xff] }
  0x15   :  { %2813 = vmatpush3.msk.msra.mxu0 %vm235_vm0, %v2594_v8  ;;  %2809 = vmatprep.mubr.msk.f32.mxu0 %vm183_vm1, %v206_v21 }
  0x18   :  { %2810 = vmatmul.mubr.msk.f32.gmra.mrb[2].mxu0 %vm183_vm1, %v191_v22 }
  0x19   :  { %2814 = vmatprep.mubr.msk.f32.mxu0 %vm183_vm1, %v192_v23 }
  0x1c   :  { %2815 = vmatmul.mubr.msk.f32.vlgmr.msra.gmra.mrb[0].mxu0 %vm183_vm1, %v217_v27 }
  0x1d   :  { %2817 = vmatprep.mubr.msk.f32.mxu0 %vm183_vm1, %v194_v28 }
  0x20   :  { %2818 = vmatmul.mubr.msk.f32.gmra.mrb[2].mxu0 %vm183_vm1, %v219_v31  ;;  %v2630_v31 = vld [vmem:[%s3664_s30 + $0x10] sm:$0xff] }
  0xef   :  { %v2816_v35 = vpop.f32.mrb[0].mxu0 }
  0xf0   :  { %v538_v36 = vadd.f32 %v2816_v35, %v2600_v34  ;;  %v507_v37 = vpop.f32.mrb[1].mxu0 }
  0xf1   :  { %v537_v38 = vadd.f32 %v2600_v34, %v507_v37 }
  0xf2   :  { %vm542_vm6 = vcmp.gt.f32.partialorder %v538_v36, 0.0  ;;  %v546_v39 = vmul.f32 0.2, %v538_v36 }
  0xf3   :  { %vm541_vm7 = vcmp.gt.f32.partialorder %v537_v38, 0.0  ;;  %v545_v40 = vmul.f32 0.2, %v537_v38  ;;  %v2819_v41 = vpop.f32.mrb[2].mxu0 }
  0xf4   :  { %v540_v42 = vadd.f32 %v2819_v41, %v2600_v34  ;;  %v517_v43 = vpop.f32.mrb[3].mxu0  ;;  %v550_v44 = vsel %vm542_vm6, %v538_v36, %v546_v39 }
  0xf5   :  { %v539_v45 = vadd.f32 %v2600_v34, %v517_v43  ;;  %v549_v46 = vsel %vm541_vm7, %v537_v38, %v545_v40  ;;  %vm660_vm9 = vcmp.gt.f32.partialorder %v550_v44, 0.0  ;;  %v664_v47 = vmul.f32 0.2, %v550_v44 }
  0xf6   :  { %vm544_vm10 = vcmp.gt.f32.partialorder %v540_v42, 0.0  ;;  %v548_v49 = vmul.f32 0.2, %v540_v42  ;;  %2822 = vmatprep.mubr.msk.f32.mxu1 %vm561_vm8, %v549_v46  ;;  %v663_v50 = vmul.f32 0.2, %v549_v46  ;;  %vm659_vm11 = vcmp.gt.f32.partialorder %v549_v46, 0.0 }
  0xf7   :  { %vm543_vm12 = vcmp.gt.f32.partialorder %v539_v45, 0.0  ;;  %v547_v51 = vmul.f32 0.2, %v539_v45  ;;  %2823 = vmatmul.mubr.msk.f32.vlgmr.msra.gmra.mrb[0].mxu1 %vm561_vm8, %v550_v44  ;;  %v668_v52 = vsel %vm660_vm9, %v550_v44, %v664_v47  ;;  %v2636_v47 = vld [vmem:[%s3666_s28 + $0x8] sm:$0xff] }
  0xf8   :  { %672 = vst.msk [vmem:[#allocation2 + $0x10] sm:$0xff] %vm561_vm8, %v668_v52  ;;  %2829 = vmatpush3.msra.mxu1 %v2606_v33  ;;  %v552_v53 = vsel %vm544_vm10, %v540_v42, %v548_v49  ;;  %v667_v54 = vsel %vm659_vm11, %v549_v46, %v663_v50  ;;  %2876 = vmatprep.subr.mxu0 %v2636_v47  ;;  %v2601_v49 = vld [vmem:[%s3622_s5] ss:$0 sm:$0xff] }
  0xf9   :  { %v551_v55 = vsel %vm543_vm12, %v539_v45, %v547_v51  ;;  %v666_v56 = vmul.f32 0.2, %v552_v53  ;;  %671 = vst.msk [vmem:[#allocation2 + $0x8] sm:$0xff] %vm561_vm8, %v667_v54  ;;  %2836 = vmatprep.subr.mxu1 %v691_v48  ;;  %vm662_vm13 = vcmp.gt.f32.partialorder %v552_v53, 0.0  ;;  %2877 = vmatpush3.msra.mxu0 %v2636_v47  ;;  %v2635_v51 = vld [vmem:[%s3623_s9] ss:$0 sm:$0xff] }
  0xfa   :  { %2825 = vmatprep.mubr.msk.f32.mxu1 %vm561_vm8, %v551_v55  ;;  %v665_v57 = vmul.f32 0.2, %v551_v55  ;;  %vm661_vm14 = vcmp.gt.f32.partialorder %v551_v55, 0.0  ;;  %vm3112_vm12 = vmmov 0  }
  0xfb   :  { %2826 = vmatmul.mubr.msk.f32.gmra.mrb[2].mxu1 %vm561_vm8, %v552_v53  ;;  %v670_v58 = vsel %vm662_vm13, %v552_v53, %v666_v56 }
  0xfc   :  { %2830 = vmatprep.mubr.msk.f32.mxu1 %vm561_vm8, %v667_v54  ;;  %v669_v59 = vsel %vm661_vm14, %v551_v55, %v665_v57  ;;  %674 = vst.msk [vmem:[#allocation2 + $0x20] sm:$0xff] %vm561_vm8, %v670_v58  ;;  %vm1994_vm14 = vcmask 261120  }
  0xfd   :  { %673 = vst.msk [vmem:[#allocation2 + $0x18] sm:$0xff] %vm561_vm8, %v669_v59 }
  0xff   :  { %2831 = vmatmul.mubr.msk.f32.vlgmr.msra.gmra.mrb[4].mxu1 %vm561_vm8, %v668_v52 }
 0x100   :  { %2833 = vmatprep.mubr.msk.f32.mxu1 %vm561_vm8, %v669_v59  ;;  %2837 = vmatpush3.msra.mxu1 %v691_v48  ;;  %v675_v61 = vld [vmem:[#allocation2 + $0x7] sm:$0xff]  ;;  %v676_v0 = vld [vmem:[#allocation2 + $0xf] sm:$0xff] }
 0x101   :  { %2844 = vmatprep.subr.mxu1 %v2615_v60  ;;  %v683_v62 = vsel %vm3274_vm2, 0.0, %v675_v61  ;;  %v679_v3 = vld [vmem:[#allocation2 + $0x9] sm:$0xff]  ;;  %v1369_v48 = vld [vmem:[%s3666_s28] sm:$0xff] }
 0x102   :  { %2884 = vmatprep.subr.mxu0 %v1369_v48  ;;  %v2645_v61 = vld [vmem:[%s3666_s28 + $0x10] sm:$0xff] }
 0x103   :  { %2834 = vmatmul.mubr.msk.f32.gmra.mrb[6].mxu1 %vm561_vm8, %v670_v58  ;;  %v682_v8 = vld [vmem:[#allocation2 + $0x21] sm:$0xff] }
 0x104   :  { %2838 = vmatprep.mubr.msk.f32.mxu1 %vm561_vm8, %v683_v62  ;;  %v677_v63 = vld [vmem:[#allocation2 + $0x17] sm:$0xff]  ;;  %v678_v2 = vld [vmem:[#allocation2 + $0x1f] sm:$0xff]  ;;  %v690_v9 = vsel %vm3301_vm5, 0.0, %v682_v8 }
 0x105   :  { %v685_v1 = vsel %vm3279_vm3, 0.0, %v677_v63  ;;  %v680_v4 = vld [vmem:[#allocation2 + $0x11] sm:$0xff]  ;;  %v681_v6 = vld [vmem:[#allocation2 + $0x19] sm:$0xff] }
 0x106   :  { %v688_v5 = vsel %vm3293_vm4, 0.0, %v680_v4 }
 0x107   :  { %2839 = vmatmul.mubr.msk.f32.vlgmr.msra.gmra.mrb[4].mxu1 %vm561_vm8, %v676_v0 }
 0x108   :  { %2841 = vmatprep.mubr.msk.f32.mxu1 %vm561_vm8, %v685_v1  ;;  %2845 = vmatpush3.msra.mxu1 %v2615_v60 }
 0x109   :  { %2852 = vmatprep.subr.mxu1 %v2621_v10 }
 0x10b   :  { %2842 = vmatmul.mubr.msk.f32.gmra.mrb[6].mxu1 %vm561_vm8, %v678_v2 }
 0x10c   :  { %2846 = vmatprep.mubr.msk.f32.mxu1 %vm561_vm8, %v679_v3 }
 0x10f   :  { %2847 = vmatmul.mubr.msk.f32.vlgmr.msra.gmra.mrb[4].mxu1 %vm561_vm8, %v688_v5 }
 0x110   :  { %2849 = vmatprep.mubr.msk.f32.mxu1 %vm561_vm8, %v681_v6  ;;  %2853 = vmatpush3.msra.mxu1 %v2621_v10 }
 0x111   :  { %2860 = vmatprep.subr.mxu1 %v1034_v11 }
 0x113   :  { %2850 = vmatmul.mubr.msk.f32.gmra.mrb[6].mxu1 %vm561_vm8, %v690_v9 }
 0x1e2   :  { %v2848_v16 = vpop.f32.mrb[4].mxu1 }
 0x1e3   :  { %v999_v17 = vadd.f32 %v2848_v16, %v2620_v15  ;;  %v968_v18 = vpop.f32.mrb[5].mxu1  ;;  %v1726_v16 = vld [vmem:[%s3624_s12] sm:$0xff] }
 0x1e4   :  { %v998_v19 = vadd.f32 %v2620_v15, %v968_v18  ;;  %v2650_v18 = vld [vmem:[%s3625_s11] ss:$0 sm:$0xff] }
 0x1e5   :  { %vm1003_vm15 = vcmp.gt.f32.partialorder %v999_v17, 0.0  ;;  %v1007_v20 = vmul.f32 0.2, %v999_v17 }
 0x1e6   :  { %vm1002_vm0 = vcmp.gt.f32.partialorder %v998_v19, 0.0  ;;  %v1006_v21 = vmul.f32 0.2, %v998_v19  ;;  %v2851_v22 = vpop.f32.mrb[6].mxu1 }
 0x1e7   :  { %v1011_v23 = vsel %vm1003_vm15, %v999_v17, %v1007_v20  ;;  %v1001_v25 = vadd.f32 %v2851_v22, %v2620_v15  ;;  %v978_v26 = vpop.f32.mrb[7].mxu1  ;;  %v3001_v17 = vpack.c.bf16 %v1727_v29, %v1726_v16  ;;  %v2668_v29 = vld [vmem:[%s3626_s14 + $0x40] sm:$0xff] }
 0x1e8   :  { %1015 = vst.msk [vmem:[#allocation2 + $0x10] sm:$0xff] %vm561_vm8, %v1011_v23  ;;  %v1000_v27 = vadd.f32 %v2620_v15, %v978_v26  ;;  %v1010_v28 = vsel %vm1002_vm0, %v998_v19, %v1006_v21 }
 0x1e9   :  { %vm1005_vm1 = vcmp.gt.f32.partialorder %v1001_v25, 0.0  ;;  %v1009_v30 = vmul.f32 0.2, %v1001_v25  ;;  %1014 = vst.msk [vmem:[#allocation2 + $0x8] sm:$0xff] %vm561_vm8, %v1010_v28  ;;  %2854 = vmatprep.mubr.msk.f32.mxu1 %vm561_vm8, %v1010_v28 }
 0x1ea   :  { %vm1004_vm6 = vcmp.gt.f32.partialorder %v1000_v27, 0.0  ;;  %v1008_v32 = vmul.f32 0.2, %v1000_v27  ;;  %2855 = vmatmul.mubr.msk.f32.vlgmr.msra.gmra.mrb[0].mxu1 %vm561_vm8, %v1011_v23 }
 0x1eb   :  { %2861 = vmatpush3.msra.mxu1 %v1034_v11  ;;  %v1013_v33 = vsel %vm1005_vm1, %v1001_v25, %v1009_v30  ;;  %v2651_v11 = vld [vmem:[%s3624_s12 + $0x10] sm:$0xff] }
 0x1ec   :  { %v1012_v34 = vsel %vm1004_vm6, %v1000_v27, %v1008_v32  ;;  %1017 = vst.msk [vmem:[#allocation2 + $0x20] sm:$0xff] %vm561_vm8, %v1013_v33  ;;  %2868 = vmatprep.subr.mxu1 %v2630_v31  ;;  %v2997_v15 = vpack.c.bf16 %v2652_v24, %v2651_v11  ;;  %vm2270_vm6 = vcmask 1042432  }
 0x1ed   :  { %1016 = vst.msk [vmem:[#allocation2 + $0x18] sm:$0xff] %vm561_vm8, %v1012_v34  ;;  %2857 = vmatprep.mubr.msk.f32.mxu1 %vm561_vm8, %v1012_v34 }
 0x1ee   :  { %2858 = vmatmul.mubr.msk.f32.gmra.mrb[2].mxu1 %vm561_vm8, %v1013_v33 }
 0x1f0   :  { %v1018_v35 = vld [vmem:[#allocation2 + $0x7] sm:$0xff]  ;;  %v1019_v37 = vld [vmem:[#allocation2 + $0xf] sm:$0xff] }
 0x1f1   :  { %v1026_v36 = vsel %vm3274_vm2, 0.0, %v1018_v35  ;;  %v1022_v41 = vld [vmem:[#allocation2 + $0x9] sm:$0xff] }
 0x1f2   :  { %2862 = vmatprep.mubr.msk.f32.mxu1 %vm561_vm8, %v1026_v36 }
 0x1f3   :  { %2863 = vmatmul.mubr.msk.f32.vlgmr.msra.gmra.mrb[0].mxu1 %vm561_vm8, %v1019_v37  ;;  %v1025_v45 = vld [vmem:[#allocation2 + $0x21] sm:$0xff] }
 0x1f4   :  { %2869 = vmatpush3.msra.mxu1 %v2630_v31  ;;  %v1020_v38 = vld [vmem:[#allocation2 + $0x17] sm:$0xff]  ;;  %v1021_v40 = vld [vmem:[#allocation2 + $0x1f] sm:$0xff]  ;;  %v1033_v46 = vsel %vm3301_vm5, 0.0, %v1025_v45 }
 0x1f5   :  { %v1028_v39 = vsel %vm3279_vm3, 0.0, %v1020_v38  ;;  %v1023_v42 = vld [vmem:[#allocation2 + $0x11] sm:$0xff]  ;;  %v1024_v44 = vld [vmem:[#allocation2 + $0x19] sm:$0xff] }
 0x1f6   :  { %2865 = vmatprep.mubr.msk.f32.mxu1 %vm561_vm8, %v1028_v39  ;;  %v1031_v43 = vsel %vm3293_vm4, 0.0, %v1023_v42 }
 0x1f7   :  { %2866 = vmatmul.mubr.msk.f32.gmra.mrb[2].mxu1 %vm561_vm8, %v1021_v40 }
 0x1f8   :  { %2870 = vmatprep.mubr.msk.f32.mxu1 %vm561_vm8, %v1022_v41  ;;  %v2657_v41 = vld [vmem:[%s3624_s12 + $0x20] sm:$0xff] }
 0x1fb   :  { %2871 = vmatmul.mubr.msk.f32.vlgmr.msra.gmra.mrb[0].mxu1 %vm561_vm8, %v1031_v43 }
 0x1fc   :  { %2873 = vmatprep.mubr.msk.f32.mxu1 %vm561_vm8, %v1024_v44  ;;  %v2658_v44 = vld [vmem:[%s3624_s12 + $0x28] sm:$0xff] }
 0x1ff   :  { %2874 = vmatmul.mubr.msk.f32.gmra.mrb[2].mxu1 %vm561_vm8, %v1033_v46  ;;  %v141_v46 = vand.u32 7, %v3256_v7 }
 0x201   :  { %vm163_vm10 = vcmp.eq.s32.totalorder %v141_v46, 7 }
 0x2ce   :  { %v2872_v50 = vpop.f32.mrb[0].mxu1 }
 0x2cf   :  { %v3051_v52 = vadd.f32 %v2872_v50, %v2601_v49  ;;  %v1311_v53 = vpop.f32.mrb[1].mxu1 }
 0x2d0   :  { %v3053_v54 = vadd.f32 %v2601_v49, %v1311_v53 }
 0x2d1   :  { %v3052_v55 = vadd.f32 %v3051_v52, %v2635_v51 }
 0x2d2   :  { %v3054_v56 = vadd.f32 %v3053_v54, %v2635_v51  ;;  %v2875_v57 = vpop.f32.mrb[2].mxu1 }
 0x2d3   :  { %1350 = vst.msk [vmem:[#allocation2 + $0x10] sm:$0xff] %vm561_vm8, %v3052_v55  ;;  %v3055_v58 = vadd.f32 %v2875_v57, %v2601_v49  ;;  %v1321_v59 = vpop.f32.mrb[3].mxu1 }
 0x2d4   :  { %1349 = vst.msk [vmem:[#allocation2 + $0x8] sm:$0xff] %vm561_vm8, %v3054_v56  ;;  %v3057_v60 = vadd.f32 %v2601_v49, %v1321_v59  ;;  %2878 = vmatprep.mubr.msk.f32.mxu0 %vm561_vm8, %v3054_v56  ;;  %v148_v49 = vand.u32 7, %v3272_v12  ;;  %v3111_v12 = vmov 0.0|0.0   ;;  %v2663_v59 = vld [vmem:[%s3626_s14 + $0x28] sm:$0xff] }
 0x2d5   :  { %v3056_v62 = vadd.f32 %v3055_v58, %v2635_v51  ;;  %2879 = vmatmul.mubr.msk.f32.vlgmr.msra.gmra.mrb[4].mxu0 %vm561_vm8, %v3052_v55  ;;  %3009 = vmatprep.subr.bf16.mxu1 %v3111_v12  ;;  %v2662_v58 = vld [vmem:[%s3626_s14 + $0x20] sm:$0xff] }
 0x2d6   :  { %v3058_v63 = vadd.f32 %v3057_v60, %v2635_v51  ;;  %2885 = vmatpush3.msra.mxu0 %v1369_v48  ;;  %v3005_v48 = vpack.c.bf16 %v2658_v44, %v2657_v41  ;;  %vm162_vm9 = vcmp.eq.s32.totalorder %v148_v49, 0  ;;  %vm164_vm11 = vcmp.eq.s32.totalorder %v148_v49, 7  ;;  %v2664_v60 = vld [vmem:[%s3626_s14 + $0x30] sm:$0xff]  ;;  %v2351_v41 = vld [vmem:[%s3629_s16 + $0x18] sm:$0xff]  ;;  %v2441_v49 = vld [vmem:[%s3629_s16 + $0x68] sm:$0xff] }
 0x2d7   :  { %1352 = vst.msk [vmem:[#allocation2 + $0x20] sm:$0xff] %vm561_vm8, %v3056_v62  ;;  %2892 = vmatprep.subr.mxu0 %v2645_v61  ;;  %v2439_v44 = vld [vmem:[%s3629_s16 + $0x58] sm:$0xff] }
 0x2d8   :  { %1351 = vst.msk [vmem:[#allocation2 + $0x18] sm:$0xff] %vm561_vm8, %v3058_v63  ;;  %2881 = vmatprep.mubr.msk.f32.mxu0 %vm561_vm8, %v3058_v63  ;;  %v2665_v63 = vld [vmem:[%s3626_s14 + $0x38] sm:$0xff] }
 0x2d9   :  { %2882 = vmatmul.mubr.msk.f32.gmra.mrb[6].mxu0 %vm561_vm8, %v3056_v62  ;;  %v3010_v62 = vpack.c.bf16 %v2663_v59, %v2662_v58 }
 0x2db   :  { %v1353_v0 = vld [vmem:[#allocation2 + $0x7] sm:$0xff]  ;;  %v1354_v2 = vld [vmem:[#allocation2 + $0xf] sm:$0xff]  ;;  %3011 = vmatpush3.bf16.msra.mxu1 %v3010_v62 }
 0x2dc   :  { %v1361_v1 = vsel %vm3274_vm2, 0.0, %v1353_v0  ;;  %v1357_v6 = vld [vmem:[#allocation2 + $0x9] sm:$0xff]  ;;  %v3013_v0 = vpack.c.bf16 %v2665_v63, %v2664_v60  ;;  %3012 = vmatprep.subr.bf16.mxu1 %v3111_v12 }
 0x2dd   :  { %2886 = vmatprep.mubr.msk.f32.mxu0 %vm561_vm8, %v1361_v1  ;;  %v2010_v1 = vld [vmem:[%s3626_s14] sm:$0xff] }
 0x2de   :  { %2887 = vmatmul.mubr.msk.f32.vlgmr.msra.gmra.mrb[4].mxu0 %vm561_vm8, %v1354_v2  ;;  %v1360_v10 = vld [vmem:[#allocation2 + $0x21] sm:$0xff] }
 0x2df   :  { %2893 = vmatpush3.msra.mxu0 %v2645_v61  ;;  %v1355_v3 = vld [vmem:[#allocation2 + $0x17] sm:$0xff]  ;;  %v1356_v5 = vld [vmem:[#allocation2 + $0x1f] sm:$0xff]  ;;  %v1368_v14 = vsel %vm3301_vm5, 0.0, %v1360_v10  ;;  %v3113_v61 = vmov 0.0   ;;  %3014 = vmatpush3.bf16.msra.mxu1 %v3013_v0  ;;  %v2011_v2 = vld [vmem:[%s3626_s14 + $0x8] sm:$0xff] }
 0x2e0   :  { %v1363_v4 = vsel %vm3279_vm3, 0.0, %v1355_v3  ;;  %v1358_v8 = vld [vmem:[#allocation2 + $0x11] sm:$0xff]  ;;  %v1359_v9 = vld [vmem:[#allocation2 + $0x19] sm:$0xff]  ;;  %2998 = vmatprep.subr.bf16.mxu0 %v2997_v15  ;;  %vm1692_vm3 = vcmask 130048   ;;  %2929 = vmatprep.mubr.msk.f32.mxu1 %vm3112_vm12, %v3113_v61  ;;  %v3016_v3 = vpack.c.bf16 %v2011_v2, %v2010_v1 }
 0x2e1   :  { %2889 = vmatprep.mubr.msk.f32.mxu0 %vm561_vm8, %v1363_v4  ;;  %v1366_v13 = vsel %vm3293_vm4, 0.0, %v1358_v8  ;;  %3021 = vmatprep.subr.bf16.mxu1 %v3111_v12  ;;  %v2012_v4 = vld [vmem:[%s3626_s14 + $0x10] sm:$0xff]  ;;  %v2661_v8 = vld [vmem:[%s3627_s13] ss:$0 sm:$0xff] }
 0x2e2   :  { %2890 = vmatmul.mubr.msk.f32.gmra.mrb[6].mxu0 %vm561_vm8, %v1356_v5  ;;  %v2013_v5 = vld [vmem:[%s3626_s14 + $0x18] sm:$0xff]  ;;  %v2673_v1 = vld [vmem:[%s3631_s15] ss:$0 sm:$0xff] }
 0x2e3   :  { %2894 = vmatprep.mubr.msk.f32.mxu0 %vm561_vm8, %v1357_v6  ;;  %v3019_v6 = vpack.c.bf16 %v2013_v5, %v2012_v4 }
 0x2e6   :  { %2895 = vmatmul.mubr.msk.f32.vlgmr.msra.gmra.mrb[4].mxu0 %vm561_vm8, %v1366_v13 }
 0x2e7   :  { %2897 = vmatprep.mubr.msk.f32.mxu0 %vm561_vm8, %v1359_v9  ;;  %3000 = vmatpush3.bf16.msra.mxu0 %v2997_v15 }
 0x2e8   :  { %3002 = vmatprep.subr.bf16.mxu0 %v3001_v17 }
 0x2ea   :  { %2898 = vmatmul.mubr.msk.f32.gmra.mrb[6].mxu0 %vm561_vm8, %v1368_v14  ;;  %vm161_vm8 = vcmp.eq.s32.totalorder %v141_v46, 0  ;;  %v2353_v46 = vld [vmem:[%s3629_s16 + $0x28] sm:$0xff] }
 0x3b9   :  { %v2896_v19 = vpop.f32.mrb[4].mxu0 }
 0x3ba   :  { %v1677_v20 = vadd.f32 %v2896_v19, %v2650_v18  ;;  %v1646_v21 = vpop.f32.mrb[5].mxu0 }
 0x3bb   :  { %v1676_v22 = vadd.f32 %v2650_v18, %v1646_v21 }
 0x3bc   :  { %vm1681_vm2 = vcmp.gt.f32.partialorder %v1677_v20, 0.0  ;;  %v1685_v23 = vmul.f32 0.2, %v1677_v20 }
 0x3bd   :  { %vm1680_vm4 = vcmp.gt.f32.partialorder %v1676_v22, 0.0  ;;  %v1684_v25 = vmul.f32 0.2, %v1676_v22  ;;  %v2899_v26 = vpop.f32.mrb[6].mxu0 }
 0x3be   :  { %v1689_v27 = vsel %vm1681_vm2, %v1677_v20, %v1685_v23  ;;  %v1679_v28 = vadd.f32 %v2899_v26, %v2650_v18  ;;  %v1656_v30 = vpop.f32.mrb[7].mxu0  ;;  %v2670_v23 = vld [vmem:[%s3626_s14 + $0x50] sm:$0xff]  ;;  %vm2266_vm2 = vcmask 23552  }
 0x3bf   :  { %v1688_v31 = vsel %vm1680_vm4, %v1676_v22, %v1684_v25  ;;  %1694 = vst.msk [vmem:[#allocation2 + $0x8] sm:$0xff] %vm1692_vm3, %v1689_v27  ;;  %v1678_v32 = vadd.f32 %v2650_v18, %v1656_v30  ;;  %v2671_v25 = vld [vmem:[%s3626_s14 + $0x58] sm:$0xff]  ;;  %v169_v27 = vand.u32 3, %v3256_v7  ;;  %v2258_v7 = vld [vmem:[%s3628_s17] sm:$0x7]  ;;  %vm2255_vm4 = vcmask 523264  }
 0x3c0   :  { %1693 = vst.msk [vmem:[#allocation2] sm:$0xff] %vm1692_vm3, %v1688_v31  ;;  %vm1683_vm5 = vcmp.gt.f32.partialorder %v1679_v28, 0.0  ;;  %v1687_v33 = vmul.f32 0.2, %v1679_v28  ;;  %v3025_v26 = vpack.c.bf16 %v2671_v25, %v2670_v23 }
 0x3c1   :  { %vm1682_vm7 = vcmp.gt.f32.partialorder %v1678_v32, 0.0  ;;  %v1686_v34 = vmul.f32 0.2, %v1678_v32  ;;  %vm177_vm0 = vcmp.eq.s32.totalorder %v169_v27, 0  ;;  %vm178_vm1 = vcmp.eq.s32.totalorder %v169_v27, 3 }
 0x3c2   :  { %v1691_v35 = vsel %vm1683_vm5, %v1679_v28, %v1687_v33  ;;  %v2348_v33 = vld [vmem:[%s3629_s16] sm:$0xff] }
 0x3c3   :  { %1696 = vst.msk [vmem:[#allocation2 + $0x18] sm:$0xff] %vm1692_vm3, %v1691_v35  ;;  %v1690_v36 = vsel %vm1682_vm7, %v1678_v32, %v1686_v34  ;;  %v2349_v34 = vld [vmem:[%s3629_s16 + $0x8] sm:$0xff]  ;;  %vm2521_vm7 = vcmask 1041408  }
 0x3c4   :  { %1695 = vst.msk [vmem:[#allocation2 + $0x10] sm:$0xff] %vm1692_vm3, %v1690_v36  ;;  %v3028_v35 = vpack.c.bf16 %v2349_v34, %v2348_v33  ;;  %v2436_v36 = vld [vmem:[%s3629_s16 + $0x40] sm:$0xff] }
 0x3c7   :  { %v1697_v37 = vld [vmem:[#allocation2] ss:$2 sm:$0xff]  ;;  %v1701_v38 = vld [vmem:[#allocation2 + $0x1] ss:$2 sm:$0xff] }
 0x3c8   :  { %v1704_v39 = vadd.f32 %v1701_v38, %v1697_v37  ;;  %v2437_v37 = vld [vmem:[%s3629_s16 + $0x48] sm:$0xff]  ;;  %v2257_v38 = vld [vmem:[%s3630_s1] sm:$0x3] }
 0x3ca   :  { %v1706_v40 = vmul.f32 0.5, %v1704_v39  ;;  %v3040_v39 = vpack.c.bf16 %v2437_v37, %v2436_v36  ;;  %v2679_v37 = vld [vmem:[%s3634_s19] ss:$0 sm:$0xff] }
 0x3cb   :  { %v1699_v42 = vld [vmem:[#allocation2 + $0x10] ss:$2 sm:$0xff]  ;;  %v1703_v43 = vld [vmem:[#allocation2 + $0x11] ss:$2 sm:$0xff] }
 0x3cc   :  { %2904 = vmatprep.mubr.msk.f32.mxu0 %vm1692_vm3, %v1706_v40  ;;  %1708 = vst.msk [vmem:[#allocation2 + $0x8] sm:$0xff] %vm1692_vm3, %v1706_v40  ;;  %v1705_v45 = vadd.f32 %v1703_v43, %v1699_v42  ;;  %v2350_v40 = vld [vmem:[%s3629_s16 + $0x10] sm:$0xff] }
 0x3cd   :  { %v2438_v42 = vld [vmem:[%s3629_s16 + $0x50] sm:$0xff]  ;;  %v3031_v43 = vpack.c.bf16 %v2351_v41, %v2350_v40  ;;  %v2681_v41 = vld [vmem:[%s3636_s21] ss:$0 sm:$0xff] }
 0x3ce   :  { %v1707_v47 = vmul.f32 0.5, %v1705_v45  ;;  %v2352_v45 = vld [vmem:[%s3629_s16 + $0x20] sm:$0xff] }
 0x3d0   :  { %2905 = vmatmul.mubr.msk.f32.vlgmr.msra.gmra.mrb[8].mxu0 %vm1692_vm3, %v1707_v47  ;;  %1709 = vst.msk [vmem:[#allocation2 + $0x10] sm:$0xff] %vm1692_vm3, %v1707_v47  ;;  %v3043_v47 = vpack.c.bf16 %v2439_v44, %v2438_v42 }
 0x3d1   :  { %3004 = vmatpush3.bf16.msra.mxu0 %v3001_v17  ;;  %v2669_v17 = vld [vmem:[%s3626_s14 + $0x48] sm:$0xff] }
 0x3d2   :  { %3006 = vmatprep.subr.bf16.mxu0 %v3005_v48  ;;  %v3022_v21 = vpack.c.bf16 %v2669_v17, %v2668_v29 }
 0x3d3   :  { %v1710_v50 = vld [vmem:[#allocation2 + $0x7] sm:$0xff] }
 0x3d4   :  { %v1718_v51 = vsel %vm161_vm8, 0.0, %v1710_v50  ;;  %v3034_v50 = vpack.c.bf16 %v2353_v46, %v2352_v45  ;;  %vm2577_vm8 = vcmask 1024  }
 0x3d5   :  { %2911 = vmatprep.mubr.msk.f32.mxu0 %vm1692_vm3, %v1718_v51 }
 0x3d7   :  { %v1711_v52 = vld [vmem:[#allocation2 + $0xf] sm:$0xff] }
 0x3d8   :  { %v1712_v53 = vld [vmem:[#allocation2 + $0x9] sm:$0xff]  ;;  %v1719_v54 = vsel %vm162_vm9, 0.0, %v1711_v52  ;;  %v1713_v56 = vld [vmem:[#allocation2 + $0x11] sm:$0xff] }
 0x3d9   :  { %v1724_v55 = vsel %vm163_vm10, 0.0, %v1712_v53  ;;  %2912 = vmatmul.mubr.msk.f32.vlgmr.msra.gmra.mrb[8].mxu0 %vm1692_vm3, %v1719_v54  ;;  %v1725_v57 = vsel %vm164_vm11, 0.0, %v1713_v56  ;;  %v2354_v52 = vld [vmem:[%s3629_s16 + $0x30] sm:$0xff]  ;;  %v2355_v53 = vld [vmem:[%s3629_s16 + $0x38] sm:$0xff] }
 0x3da   :  { %3008 = vmatpush3.bf16.msra.mxu0 %v3005_v48  ;;  %2918 = vmatprep.mubr.msk.f32.mxu0 %vm1692_vm3, %v1724_v55  ;;  %v2440_v48 = vld [vmem:[%s3629_s16 + $0x60] sm:$0xff]  ;;  %v2442_v54 = vld [vmem:[%s3629_s16 + $0x70] sm:$0xff]  ;;  %v2443_v55 = vld [vmem:[%s3629_s16 + $0x78] sm:$0xff]  ;;  %v3037_v56 = vpack.c.bf16 %v2355_v53, %v2354_v52 }
 0x3db   :  { %3015 = vmatprep.subr.bf16.mxu0 %v3111_v12  ;;  %v3046_v51 = vpack.c.bf16 %v2441_v49, %v2440_v48 }
 0x3e1   :  { %2919 = vmatmul.mubr.msk.f32.vlgmr.msra.gmra.mrb[8].mxu0 %vm1692_vm3, %v1725_v57  ;;  %v3049_v57 = vpack.c.bf16 %v2443_v55, %v2442_v54 }
 0x3e2   :  { %2940 = vmatprep.mubr.msk.f32.mxu0 %vm3112_vm12, %v3113_v61  ;;  %3017 = vmatpush3.bf16.msra.mxu0 %v3016_v3 }
 0x3e3   :  { %3018 = vmatprep.subr.bf16.mxu0 %v3111_v12 }
 0x3e6   :  { %3020 = vmatpush3.bf16.msra.mxu0 %v3019_v6 }
 0x3e7   :  { %2954 = vmatprep.subr.mxu0 %v3113_v61 }
 0x4b4   :  { %v2920_v13 = vpop.f32.mrb[8].mxu0 }
 0x4b5   :  { %v1987_v9 = vadd.f32 %v2920_v13, %v2661_v8  ;;  %v1968_v10 = vpop.f32.mrb[9].mxu0 }
 0x4b6   :  { %v1986_v14 = vadd.f32 %v2661_v8, %v1968_v10 }
 0x4b7   :  { %vm1989_vm13 = vcmp.gt.f32.partialorder %v1987_v9, 0.0  ;;  %v1991_v11 = vmul.f32 0.2, %v1987_v9 }
 0x4b8   :  { %vm1988_vm15 = vcmp.gt.f32.partialorder %v1986_v14, 0.0  ;;  %v1990_v24 = vmul.f32 0.2, %v1986_v14 }
 0x4b9   :  { %v1993_v15 = vsel %vm1989_vm13, %v1987_v9, %v1991_v11 }
 0x4ba   :  { %v1992_v16 = vsel %vm1988_vm15, %v1986_v14, %v1990_v24  ;;  %1996 = vst.msk [vmem:[#allocation2 + $0x8] sm:$0xff] %vm1994_vm14, %v1993_v15 }
 0x4bb   :  { %1995 = vst.msk [vmem:[#allocation2] sm:$0xff] %vm1994_vm14, %v1992_v16  ;;  %v2674_v16 = vld [vmem:[%s3632_s18] ss:$0 sm:$0xff] }
 0x4c2   :  { %v1997_v18 = vld [vmem:[#allocation2] ss:$2 sm:$0xff]  ;;  %v1998_v19 = vld [vmem:[#allocation2 + $0x1] ss:$2 sm:$0xff] }
 0x4c3   :  { %v1999_v20 = vadd.f32 %v1998_v19, %v1997_v18 }
 0x4c5   :  { %v2000_v22 = vmul.f32 0.5, %v1999_v20 }
 0x4c7   :  { %2930 = vmatmul.mubr.msk.f32.vlgmr.msra.gmra.mrb[8].mxu1 %vm1994_vm14, %v2000_v22  ;;  %2001 = vst.msk [vmem:[#allocation2 + $0x8] sm:$0xff] %vm1994_vm14, %v2000_v22 }
 0x4c8   :  { %3023 = vmatpush3.bf16.msra.mxu1 %v3022_v21  ;;  %2951 = vmatprep.mubr.msk.f32.mxu1 %vm3112_vm12, %v3113_v61 }
 0x4c9   :  { %3024 = vmatprep.subr.bf16.mxu1 %v3111_v12 }
 0x4cc   :  { %3026 = vmatpush3.bf16.msra.mxu1 %v3025_v26 }
 0x4cd   :  { %3027 = vmatprep.subr.bf16.mxu1 %v3111_v12 }
 0x4ce   :  { %v2002_v28 = vld [vmem:[#allocation2 + $0x7] sm:$0xff] }
 0x4cf   :  { %v2003_v30 = vld [vmem:[#allocation2 + $0x9] sm:$0xff]  ;;  %v2006_v31 = vsel %vm177_vm0, 0.0, %v2002_v28 }
 0x4d0   :  { %v2009_v32 = vsel %vm178_vm1, 0.0, %v2003_v30  ;;  %2941 = vmatmul.mubr.msk.f32.vlgmr.msra.gmra.mrb[10].mxu0 %vm1994_vm14, %v2006_v31 }
 0x4d1   :  { %2952 = vmatmul.mubr.msk.f32.vlgmr.msra.gmra.mrb[10].mxu1 %vm1994_vm14, %v2009_v32  ;;  %2956 = vmatprep.mubr.msk.f32.mxu0 %vm3112_vm12, %v3113_v61 }
 0x4d2   :  { %2975 = vmatprep.mubr.msk.f32.mxu1 %vm3112_vm12, %v3113_v61  ;;  %2955 = vmatpush3.msk.msra.mxu0 %vm2270_vm6, %v2258_v7  ;;  %v28_v7 = vstv %s3633_s22 }
 0x4d3   :  { %3039 = vmatprep.subr.bf16.mxu0 %v3111_v12  ;;  %3029 = vmatpush3.bf16.msra.mxu1 %v3028_v35  ;;  %29 = vst [vmem:[#allocation3] sm:$0x1] %v28_v7 }
 0x4d4   :  { %2957 = vmatmul.mubr.msk.f32.vlgmr.msra.gmra.mrb[12].mxu0 %vm2266_vm2, %v2257_v38  ;;  %3030 = vmatprep.subr.bf16.mxu1 %v3111_v12 }
 0x4d5   :  { %3041 = vmatpush3.bf16.msra.mxu0 %v3040_v39  ;;  %2994 = vmatprep.mubr.msk.f32.mxu0 %vm3112_vm12, %v3113_v61  ;;  %v2680_v39 = vld [vmem:[%s3635_s20] ss:$0 sm:$0xff] }
 0x4d6   :  { %3042 = vmatprep.subr.bf16.mxu0 %v3111_v12 }
 0x4d7   :  { %3032 = vmatpush3.bf16.msra.mxu1 %v3031_v43 }
 0x4d8   :  { %3033 = vmatprep.subr.bf16.mxu1 %v3111_v12 }
 0x4d9   :  { %3044 = vmatpush3.bf16.msra.mxu0 %v3043_v47 }
 0x4da   :  { %3045 = vmatprep.subr.bf16.mxu0 %v3111_v12  ;;  %v2682_v45 = vld [vmem:[#allocation3] ss:$0 sm:$0xff] }
 0x4db   :  { %3035 = vmatpush3.bf16.msra.mxu1 %v3034_v50 }
 0x4dc   :  { %3036 = vmatprep.subr.bf16.mxu1 %v3111_v12 }
 0x4dd   :  { %3047 = vmatpush3.bf16.msra.mxu0 %v3046_v51 }
 0x4de   :  { %3048 = vmatprep.subr.bf16.mxu0 %v3111_v12 }
 0x4df   :  { %3038 = vmatpush3.bf16.msra.mxu1 %v3037_v56 }
 0x4e1   :  { %3050 = vmatpush3.bf16.msra.mxu0 %v3049_v57 }
 0x59a   :  { %v2088_v58 = vpop.f32.mrb[8].mxu1 }
 0x59b   :  { %v2931_v59 = vpop.f32.mrb[9].mxu1 }
 0x5a3   :  { %v2161_v60 = vpop.f32.mrb[10].mxu0 }
 0x5a4   :  { %v2239_v61 = vpop.f32.mrb[10].mxu1  ;;  %v2162_v62 = vadd.f32 %v2161_v60, %v2088_v58  ;;  %v2942_v63 = vpop.f32.mrb[11].mxu0 }
 0x5a5   :  { %v2953_v0 = vpop.f32.mrb[11].mxu1 }
 0x5a6   :  { %v2243_v2 = vadd.f32 %v2239_v61, %v2162_v62 }
 0x5a7   :  { %v2340_v24 = vpop.f32.mrb[12].mxu0 }
 0x5a8   :  { %v2251_v3 = vadd.f32 %v2673_v1, %v2243_v2  ;;  %v2958_v15 = vpop.f32.mrb[13].mxu0  ;;  %v2341_v29 = vadd.f32 %v2674_v16, %v2340_v24 }
 0x5aa   :  { %vm2252_vm3 = vcmp.gt.f32.partialorder %v2251_v3, 0.0  ;;  %v2253_v4 = vmul.f32 0.2, %v2251_v3 }
 0x5ac   :  { %v2254_v5 = vsel %vm2252_vm3, %v2251_v3, %v2253_v4 }
 0x5ad   :  { %2256 = vst.msk [vmem:[#allocation2] sm:$0xff] %vm2255_vm4, %v2254_v5 }
 0x5b4   :  { %v2344_v12 = vld [vmem:[#allocation2] ss:$4 sm:$0x3]  ;;  %v2345_v6 = vld [vmem:[#allocation2 + $0x1] ss:$4 sm:$0x3] }
 0x5b5   :  { %v2346_v8 = vadd.f32 %v2345_v6, %v2344_v12  ;;  %v2431_v13 = vld [vmem:[#allocation2 + $0x2] ss:$4 sm:$0x3]  ;;  %v2433_v9 = vld [vmem:[#allocation2 + $0x3] ss:$4 sm:$0x3] }
 0x5b6   :  { %v2434_v10 = vadd.f32 %v2433_v9, %v2431_v13 }
 0x5b7   :  { %v2347_v14 = vmul.f32 0.5, %v2346_v8 }
 0x5b8   :  { %v2435_v11 = vmul.f32 0.5, %v2434_v10 }
 0x5b9   :  { %2976 = vmatmul.mubr.msk.f32.vlgmr.msra.gmra.mrb[12].mxu1 %vm2255_vm4, %v2347_v14 }
 0x5ba   :  { %2995 = vmatmul.mubr.msk.f32.vlgmr.msra.gmra.mrb[14].mxu0 %vm2255_vm4, %v2435_v11 }
 0x68c   :  { %v2425_v17 = vpop.f32.mrb[12].mxu1 }
 0x68d   :  { %v2429_v18 = vadd.f32 %v2425_v17, %v2341_v29  ;;  %v2513_v19 = vpop.f32.mrb[14].mxu0  ;;  %v2977_v20 = vpop.f32.mrb[13].mxu1 }
 0x68e   :  { %v2996_v21 = vpop.f32.mrb[15].mxu0 }
 0x68f   :  { %v2517_v22 = vadd.f32 %v2513_v19, %v2429_v18 }
 0x691   :  { %v2519_v23 = vmul.f32 0.2, %v2517_v22  ;;  %vm2518_vm5 = vcmp.gt.f32.partialorder %v2517_v22, 0.0 }
 0x693   :  { %v2520_v25 = vsel %vm2518_vm5, %v2517_v22, %v2519_v23 }
 0x694   :  { %v2522_v26 = vsel %vm2521_vm7, %v2520_v25, 0.0 }
 0x695   :  { %2523 = vadd.xlane.f32.xlu0 %v2522_v26 }
 0x722   :  { %v2524_v27 = vpop.xlane.xlu0 %2523 }
 0x723   :  { %v2526_v28 = vmul.f32 0.0078125, %v2524_v27 }
 0x725   :  { %v2527_v30 = vsub.f32 %v2520_v25, %v2526_v28 }
 0x727   :  { %v2528_v31 = vmul.f32 %v2527_v30, %v2527_v30 }
 0x729   :  { %v2529_v32 = vsel %vm2521_vm7, %v2528_v31, 0.0 }
 0x72a   :  { %2530 = vadd.xlane.f32.xlu0 %v2529_v32 }
 0x7b7   :  { %v2531_v33 = vpop.xlane.xlu0 %2530 }
 0x7b8   :  { %v2532_v34 = vmul.f32 0.0078125, %v2531_v33 }
 0x7ba   :  { %v2533_v35 = vadd.f32 1e-05, %v2532_v34 }
 0x7bc   :  { %3105 = vrsqrt.f32 %v2533_v35 }
 0x7c6   :  { %v3106_v36 = vpop.eup %3105 }
 0x7c7   :  { %v2535_v38 = vmul.f32 %v3106_v36, %v2527_v30 }
 0x7c9   :  { %v2543_v40 = vmul.f32 %v2679_v37, %v2535_v38 }
 0x7cb   :  { %v2551_v42 = vadd.f32 %v2680_v39, %v2543_v40 }
 0x7cd   :  { %v2559_v43 = vmul.f32 %v2681_v41, %v2551_v42 }
 0x7cf   :  { %v2560_v44 = vsel %vm2521_vm7, %v2559_v43, 0.0 }
 0x7d0   :  { %2561 = vadd.xlane.f32.xlu1 %v2560_v44 }
 0x85d   :  { %v2562_v46 = vpop.xlane.xlu1 %2561 }
 0x85e   :  { %v2570_v47 = vadd.f32 %v2682_v45, %v2562_v46 }
 0x860   :  { %v2683_v48 = vmul.f32 -1.442695, %v2570_v47 }
 0x862   :  { %3107 = vpow2.f32 %v2683_v48 }
 0x86c   :  { %v3108_v49 = vpop.eup %3107 }
 0x86d   :  { %v2574_v50 = vadd.f32 1.0, %v3108_v49 }
 0x86f   :  { %3109 = vrcp.f32 %v2574_v50 }
 0x879   :  { %v3110_v51 = vpop.eup %3109 }
 0x87a   :  { %2578 = vst.msk [vmem:[%s3637_s23] sm:$0x3] %vm2577_vm8, %v3110_v51 }

</bundles_post_ra>
